<compile_context>
chip_gen: v5e
topology: v5e:2x2
jax: 0.10.0
libtpu: 0.0.40
codegen_flags: <defaults>
</compile_context>

<pallas_src>
import jax
import jax.numpy as jnp
from jax import lax
from jax.experimental import pallas as pl
from jax.experimental.pallas import tpu as pltpu


def self_attn_kernel(x_tile_ref, x_full_ref, wq_ref, wvk_ref,
                     bq_ref, bvk_ref, gamma_ref, out_ref, attn_ref):
    c_pad = out_ref.shape[-1]

    x_tile = x_tile_ref[...]                               # (TQ, C_pad) f32 (residual)
    x_full = x_full_ref[...]                               # (N,  C_pad) f32

    xt = x_tile.astype(jnp.bfloat16)
    xf = x_full.astype(jnp.bfloat16)

    # Query projection for this tile (1x1 conv == per-pixel channel matmul).
    q = jnp.dot(xt, wq_ref[...].astype(jnp.bfloat16),
                preferred_element_type=jnp.float32) + bq_ref[...]        # (TQ, C8)

    # Fused value|key projection for all pixels (lane-dense MXU output).
    vk = jnp.dot(xf, wvk_ref[...].astype(jnp.bfloat16),
                 preferred_element_type=jnp.float32) + bvk_ref[...]      # (N, C_pad+C8)
    v = vk[:, :c_pad]                                                    # (N, C_pad)
    k = vk[:, c_pad:]                                                    # (N, C8)

    # energy[i, j] = <q_i, k_j>: contract on the channel dim (no k.T transpose copy).
    energy = lax.dot_general(
        q.astype(jnp.bfloat16), k.astype(jnp.bfloat16),
        (((1,), (1,)), ((), ())),
        preferred_element_type=jnp.float32)                              # (TQ, N)

    # Row softmax (each query row sees all keys, so no online softmax needed).
    m = jnp.max(energy, axis=-1, keepdims=True)
    p = jnp.exp(energy - m)                                              # (TQ, N)
    inv = pl.reciprocal(jnp.sum(p, axis=-1, keepdims=True), approx=True)  # (TQ, 1)

    # out_nc = attn @ v, with 1/rowsum and gamma folded into the epilogue scale.
    pv = jnp.dot(p.astype(jnp.bfloat16), v.astype(jnp.bfloat16),
                 preferred_element_type=jnp.float32)                     # (TQ, C_pad)

    gamma = gamma_ref[0, 0]
    out_ref[...] = (gamma * inv) * pv + x_tile
    attn_ref[...] = p * inv                                              # normalized attention


def self_attn_pallas(x_nchw, wq, wk, wv, bq, bk, bv, gamma, *, tq=128):
    """x_nchw: (B, C, W, H). Returns (out_nchw, attention (B, N, N))."""
    B, C, W, H = x_nchw.shape
    N = W * H
    C8 = wq.shape[1]
    f32 = jnp.float32

    TQ = min(tq, N)
    assert N % TQ == 0 and TQ % 8 == 0, "query tile must divide N and be sublane-aligned"

    # Pad channels to a lane-dense multiple of 128 (zero rows/cols keep the math identical).
    C_pad = max(128, ((C + 127) // 128) * 128)
    pad_c = C_pad - C

    # NCHW -> (B, N, C_pad), pixel n = w*H + h (same flattening as torch .view).
    x_bnc = jnp.transpose(x_nchw, (0, 2, 3, 1)).reshape(B, N, C)
    x_pad = jnp.pad(x_bnc, ((0, 0), (0, 0), (0, pad_c)))

    wq_p = jnp.pad(wq, ((0, pad_c), (0, 0)))                 # (C_pad, C8)
    wk_p = jnp.pad(wk, ((0, pad_c), (0, 0)))                 # (C_pad, C8)
    wv_p = jnp.pad(wv, ((0, pad_c), (0, pad_c)))             # (C_pad, C_pad)
    w_vk = jnp.concatenate([wv_p, wk_p], axis=1)             # (C_pad, C_pad + C8)
    bv_p = jnp.pad(bv, ((0, 0), (0, pad_c)))                 # (1, C_pad)
    b_vk = jnp.concatenate([bv_p, bk], axis=1)               # (1, C_pad + C8)

    grid = (B, N // TQ)
    full = lambda shape: pl.BlockSpec(shape, lambda b, i: tuple(0 for _ in shape))

    out_pad, attn = pl.pallas_call(
        self_attn_kernel,
        out_shape=(
            jax.ShapeDtypeStruct((B, N, C_pad), f32),
            jax.ShapeDtypeStruct((B, N, N), f32),
        ),
        grid_spec=pltpu.PrefetchScalarGridSpec(
            num_scalar_prefetch=0,
            grid=grid,
            in_specs=[
                pl.BlockSpec((None, TQ, C_pad), lambda b, i: (b, i, 0)),  # x (query tile)
                pl.BlockSpec((None, N, C_pad), lambda b, i: (b, 0, 0)),   # x (full; DMA'd once per batch)
                full((C_pad, C8)),                                        # Wq   (tiny; default buffering)
                full((C_pad, C_pad + C8)),                                # [Wv | Wk]
                full((1, C8)),                                            # bq
                full((1, C_pad + C8)),                                    # [bv | bk]
                pl.BlockSpec(memory_space=pltpu.SMEM),                    # gamma (1, 1)
            ],
            out_specs=[
                pl.BlockSpec((None, TQ, C_pad), lambda b, i: (b, i, 0)),  # out (lane-dense C_pad)
                pl.BlockSpec((None, TQ, N), lambda b, i: (b, i, 0)),      # attention (lane-dense N)
            ],
        ),
        compiler_params=pltpu.CompilerParams(
            dimension_semantics=("parallel", "parallel"),
            vmem_limit_bytes=64 * 1024 * 1024),
    )(x_pad, x_pad, wq_p, w_vk, bq, b_vk, gamma)

    out_bnc = out_pad[:, :, :C]
    out_nchw = jnp.transpose(out_bnc.reshape(B, W, H, C), (0, 3, 1, 2))
    return out_nchw, attn


def self_attn_reference(x_nchw, wq, wk, wv, bq, bk, bv, gamma):
    """Pure-JAX f32 reference mirroring the PyTorch forward exactly."""
    B, C, W, H = x_nchw.shape
    N = W * H
    x_bnc = jnp.transpose(x_nchw, (0, 2, 3, 1)).reshape(B, N, C)
    q = x_bnc @ wq + bq                                  # (B, N, C8)
    k = x_bnc @ wk + bk                                  # (B, N, C8)
    v = x_bnc @ wv + bv                                  # (B, N, C)
    energy = jnp.einsum("bic,bjc->bij", q, k)            # (B, N, N)
    attn = jax.nn.softmax(energy, axis=-1)
    out = jnp.einsum("bij,bjc->bic", attn, v)            # (B, N, C)
    out = gamma[0, 0] * out + x_bnc
    out_nchw = jnp.transpose(out.reshape(B, W, H, C), (0, 3, 1, 2))
    return out_nchw, attn


if __name__ == "__main__":
    # Small shapes consistent with the module (in_dim // 8 >= 1); N = 256 so the
    # kernel runs with two query tiles of 128.
    B, C, W, H = 2, 32, 16, 16
    C8 = C // 8

    key = jax.random.PRNGKey(0)
    kx, kwq, kwk, kwv, kbq, kbk, kbv = jax.random.split(key, 7)

    x = jax.random.normal(kx, (B, C, W, H), dtype=jnp.float32)

    # 1x1 conv weights (out, in, 1, 1) stored as (in, out) matrices for x @ W.
    wq = jax.random.normal(kwq, (C, C8), dtype=jnp.float32) * 0.1
    wk = jax.random.normal(kwk, (C, C8), dtype=jnp.float32) * 0.1
    wv = jax.random.normal(kwv, (C, C), dtype=jnp.float32) * 0.1
    bq = jax.random.normal(kbq, (1, C8), dtype=jnp.float32) * 0.1
    bk = jax.random.normal(kbk, (1, C8), dtype=jnp.float32) * 0.1
    bv = jax.random.normal(kbv, (1, C), dtype=jnp.float32) * 0.1
    # The module initializes gamma to zero; use a nonzero value here so the
    # attention path actually contributes to the checked output.
    gamma = jnp.full((1, 1), 0.75, dtype=jnp.float32)

    out, attn = self_attn_pallas(x, wq, wk, wv, bq, bk, bv, gamma, tq=128)
    out = jax.block_until_ready(out)
    attn = jax.block_until_ready(attn)

    out_ref, attn_ref = self_attn_reference(x, wq, wk, wv, bq, bk, bv, gamma)

    assert out.shape == (B, C, W, H)
    assert attn.shape == (B, W * H, W * H)
    # bf16 MXU inputs (f32 accumulation) vs the pure-f32 reference -> loosened tol.
    assert jnp.allclose(attn, attn_ref, atol=2e-2, rtol=2e-2), \
        float(jnp.max(jnp.abs(attn - attn_ref)))
    assert jnp.allclose(out, out_ref, atol=2e-2, rtol=2e-2), \
        float(jnp.max(jnp.abs(out - out_ref)))

    print("KERNEL_OK")
</pallas_src>

<mosaic_0001>
module attributes {stable_mosaic.version = 11 : i64} {
  func.func @self_attn_kernel(%arg0: i32, %arg1: i32, %arg2: memref<1x128x128xf32, #tpu.memory_space<vmem>>, %arg3: memref<1x256x128xf32, #tpu.memory_space<vmem>>, %arg4: memref<128x4xf32, #tpu.memory_space<vmem>>, %arg5: memref<128x132xf32, #tpu.memory_space<vmem>>, %arg6: memref<1x4xf32, #tpu.memory_space<vmem>>, %arg7: memref<1x132xf32, #tpu.memory_space<vmem>>, %arg8: memref<1x1xf32, #tpu.memory_space<smem>>, %arg9: memref<1x128x128xf32, #tpu.memory_space<vmem>>, %arg10: memref<1x128x256xf32, #tpu.memory_space<vmem>>) attributes {dimension_semantics = [#tpu.dimension_semantics<parallel>, #tpu.dimension_semantics<parallel>], iteration_bounds = array<i64: 2, 2>, scalar_prefetch = 0 : i64, scratch_operands = 0 : i64, tpu.core_type = #tpu.core_type<tc>, window_params = [{transform_indices = @transform_0, window_bounds = array<i64: 1, 128, 128>}, {transform_indices = @transform_1, window_bounds = array<i64: 1, 256, 128>}, {pipeline_mode = #tpu.pipeline_mode<synchronous>, transform_indices = @transform_2, window_bounds = array<i64: 128, 4>}, {pipeline_mode = #tpu.pipeline_mode<synchronous>, transform_indices = @transform_3, window_bounds = array<i64: 128, 132>}, {pipeline_mode = #tpu.pipeline_mode<synchronous>, transform_indices = @transform_4, window_bounds = array<i64: 1, 4>}, {pipeline_mode = #tpu.pipeline_mode<synchronous>, transform_indices = @transform_5, window_bounds = array<i64: 1, 132>}, {transform_indices = @transform_6, window_bounds = array<i64: 1, 1>}, {transform_indices = @transform_7, window_bounds = array<i64: 1, 128, 128>}, {transform_indices = @transform_8, window_bounds = array<i64: 1, 128, 256>}]} {
    %c0 = arith.constant 0 : index
    %c0_0 = arith.constant 0 : index
    %c0_1 = arith.constant 0 : index
    %0 = vector.load %arg2[%c0, %c0_0, %c0_1] : memref<1x128x128xf32, #tpu.memory_space<vmem>>, vector<1x128x128xf32>
    %1 = vector.shape_cast %0 : vector<1x128x128xf32> to vector<128x128xf32>
    %c0_2 = arith.constant 0 : index
    %c0_3 = arith.constant 0 : index
    %c0_4 = arith.constant 0 : index
    %2 = vector.load %arg3[%c0_2, %c0_3, %c0_4] : memref<1x256x128xf32, #tpu.memory_space<vmem>>, vector<1x256x128xf32>
    %3 = vector.shape_cast %2 : vector<1x256x128xf32> to vector<256x128xf32>
    %4 = arith.truncf %1 : vector<128x128xf32> to vector<128x128xbf16>
    %5 = arith.truncf %3 : vector<256x128xf32> to vector<256x128xbf16>
    %c0_5 = arith.constant 0 : index
    %c0_6 = arith.constant 0 : index
    %6 = vector.load %arg4[%c0_5, %c0_6] : memref<128x4xf32, #tpu.memory_space<vmem>>, vector<128x4xf32>
    %7 = arith.truncf %6 : vector<128x4xf32> to vector<128x4xbf16>
    %cst = arith.constant dense<0.000000e+00> : vector<128x4xf32>
    %8 = tpu.matmul %4, %7, %cst {dimension_numbers = #tpu.dot_dimension_numbers<[1], [0], [0], [1], [0, 0, 1, 1], [], []>} : vector<128x128xbf16>, vector<128x4xbf16>, vector<128x4xf32> -> vector<128x4xf32>
    %c0_7 = arith.constant 0 : index
    %c0_8 = arith.constant 0 : index
    %9 = vector.load %arg6[%c0_7, %c0_8] : memref<1x4xf32, #tpu.memory_space<vmem>>, vector<1x4xf32>
    %10 = vector.broadcast %9 : vector<1x4xf32> to vector<128x4xf32>
    %11 = arith.addf %8, %10 : vector<128x4xf32>
    %c0_9 = arith.constant 0 : index
    %c0_10 = arith.constant 0 : index
    %12 = vector.load %arg5[%c0_9, %c0_10] : memref<128x132xf32, #tpu.memory_space<vmem>>, vector<128x132xf32>
    %13 = arith.truncf %12 : vector<128x132xf32> to vector<128x132xbf16>
    %cst_11 = arith.constant dense<0.000000e+00> : vector<256x132xf32>
    %14 = tpu.matmul %5, %13, %cst_11 {dimension_numbers = #tpu.dot_dimension_numbers<[1], [0], [0], [1], [0, 0, 1, 1], [], []>} : vector<256x128xbf16>, vector<128x132xbf16>, vector<256x132xf32> -> vector<256x132xf32>
    %c0_12 = arith.constant 0 : index
    %c0_13 = arith.constant 0 : index
    %15 = vector.load %arg7[%c0_12, %c0_13] : memref<1x132xf32, #tpu.memory_space<vmem>>, vector<1x132xf32>
    %16 = vector.broadcast %15 : vector<1x132xf32> to vector<256x132xf32>
    %17 = arith.addf %14, %16 : vector<256x132xf32>
    %18 = vector.extract_strided_slice %17 {offsets = [0, 0], sizes = [256, 128], strides = [1, 1]} : vector<256x132xf32> to vector<256x128xf32>
    %19 = vector.extract_strided_slice %17 {offsets = [0, 128], sizes = [256, 4], strides = [1, 1]} : vector<256x132xf32> to vector<256x4xf32>
    %20 = arith.truncf %11 : vector<128x4xf32> to vector<128x4xbf16>
    %21 = arith.truncf %19 : vector<256x4xf32> to vector<256x4xbf16>
    %cst_14 = arith.constant dense<0.000000e+00> : vector<128x256xf32>
    %22 = tpu.matmul %20, %21, %cst_14 {dimension_numbers = #tpu.dot_dimension_numbers<[1], [1], [0], [0], [0, 0, 1, 0], [], []>} : vector<128x4xbf16>, vector<256x4xbf16>, vector<128x256xf32> -> vector<128x256xf32>
    %cst_15 = arith.constant dense<0xFF800000> : vector<128xf32>
    %23 = vector.multi_reduction <maximumf>, %22, %cst_15 [1] : vector<128x256xf32> to vector<128xf32>
    %24 = vector.shape_cast %23 : vector<128xf32> to vector<128x1xf32>
    %25 = vector.broadcast %24 : vector<128x1xf32> to vector<128x256xf32>
    %26 = arith.subf %22, %25 : vector<128x256xf32>
    %27 = math.exp %26 : vector<128x256xf32>
    %cst_16 = arith.constant dense<0.000000e+00> : vector<128xf32>
    %28 = vector.multi_reduction <add>, %27, %cst_16 [1] : vector<128x256xf32> to vector<128xf32>
    %29 = vector.shape_cast %28 : vector<128xf32> to vector<128x1xf32>
    %30 = tpu.reciprocal %29 {approx = true} : vector<128x1xf32> -> vector<128x1xf32>
    %31 = arith.truncf %27 : vector<128x256xf32> to vector<128x256xbf16>
    %32 = arith.truncf %18 : vector<256x128xf32> to vector<256x128xbf16>
    %cst_17 = arith.constant dense<0.000000e+00> : vector<128x128xf32>
    %33 = tpu.matmul %31, %32, %cst_17 {dimension_numbers = #tpu.dot_dimension_numbers<[1], [0], [0], [1], [0, 0, 1, 1], [], []>} : vector<128x256xbf16>, vector<256x128xbf16>, vector<128x128xf32> -> vector<128x128xf32>
    %c0_18 = arith.constant 0 : index
    %c0_19 = arith.constant 0 : index
    %34 = memref.load %arg8[%c0_18, %c0_19] : memref<1x1xf32, #tpu.memory_space<smem>>
    %35 = vector.broadcast %34 : f32 to vector<128x1xf32>
    %36 = arith.mulf %35, %30 : vector<128x1xf32>
    %37 = vector.broadcast %36 : vector<128x1xf32> to vector<128x128xf32>
    %38 = arith.mulf %37, %33 : vector<128x128xf32>
    %39 = arith.addf %38, %1 : vector<128x128xf32>
    %c0_20 = arith.constant 0 : index
    %c0_21 = arith.constant 0 : index
    %c0_22 = arith.constant 0 : index
    %40 = vector.load %arg9[%c0_20, %c0_21, %c0_22] : memref<1x128x128xf32, #tpu.memory_space<vmem>>, vector<1x128x128xf32>
    %41 = vector.shape_cast %40 : vector<1x128x128xf32> to vector<128x128xf32>
    %42 = vector.shape_cast %39 : vector<128x128xf32> to vector<1x128x128xf32>
    tpu.vector_store %arg9[%c0_20, %c0_21, %c0_22], %42 {strides = array<i32>} : memref<1x128x128xf32, #tpu.memory_space<vmem>>, vector<1x128x128xf32>,
    %43 = vector.broadcast %30 : vector<128x1xf32> to vector<128x256xf32>
    %44 = arith.mulf %27, %43 : vector<128x256xf32>
    %c0_23 = arith.constant 0 : index
    %c0_24 = arith.constant 0 : index
    %c0_25 = arith.constant 0 : index
    %45 = vector.load %arg10[%c0_23, %c0_24, %c0_25] : memref<1x128x256xf32, #tpu.memory_space<vmem>>, vector<1x128x256xf32>
    %46 = vector.shape_cast %45 : vector<1x128x256xf32> to vector<128x256xf32>
    %47 = vector.shape_cast %44 : vector<128x256xf32> to vector<1x128x256xf32>
    tpu.vector_store %arg10[%c0_23, %c0_24, %c0_25], %47 {strides = array<i32>} : memref<1x128x256xf32, #tpu.memory_space<vmem>>, vector<1x128x256xf32>,
    return
  }
  func.func @transform_0(%arg0: i32, %arg1: i32) -> (i32, i32, i32) {
    %c0_i32 = arith.constant 0 : i32
    %c0_i32_0 = arith.constant 0 : i32
    return %arg0, %arg1, %c0_i32 : i32, i32, i32
  }
  func.func @transform_1(%arg0: i32, %arg1: i32) -> (i32, i32, i32) {
    %c0_i32 = arith.constant 0 : i32
    %c0_i32_0 = arith.constant 0 : i32
    %c0_i32_1 = arith.constant 0 : i32
    return %arg0, %c0_i32, %c0_i32_0 : i32, i32, i32
  }
  func.func @transform_2(%arg0: i32, %arg1: i32) -> (i32, i32) {
    %c0_i32 = arith.constant 0 : i32
    %c0_i32_0 = arith.constant 0 : i32
    %c0_i32_1 = arith.constant 0 : i32
    return %c0_i32, %c0_i32_0 : i32, i32
  }
  func.func @transform_3(%arg0: i32, %arg1: i32) -> (i32, i32) {
    %c0_i32 = arith.constant 0 : i32
    %c0_i32_0 = arith.constant 0 : i32
    %c0_i32_1 = arith.constant 0 : i32
    return %c0_i32, %c0_i32_0 : i32, i32
  }
  func.func @transform_4(%arg0: i32, %arg1: i32) -> (i32, i32) {
    %c0_i32 = arith.constant 0 : i32
    %c0_i32_0 = arith.constant 0 : i32
    %c0_i32_1 = arith.constant 0 : i32
    return %c0_i32, %c0_i32_0 : i32, i32
  }
  func.func @transform_5(%arg0: i32, %arg1: i32) -> (i32, i32) {
    %c0_i32 = arith.constant 0 : i32
    %c0_i32_0 = arith.constant 0 : i32
    %c0_i32_1 = arith.constant 0 : i32
    return %c0_i32, %c0_i32_0 : i32, i32
  }
  func.func @transform_6(%arg0: i32, %arg1: i32) -> (i32, i32) {
    %c0_i32 = arith.constant 0 : i32
    %c0_i32_0 = arith.constant 0 : i32
    %c0_i32_1 = arith.constant 0 : i32
    return %c0_i32, %c0_i32_0 : i32, i32
  }
  func.func @transform_7(%arg0: i32, %arg1: i32) -> (i32, i32, i32) {
    %c0_i32 = arith.constant 0 : i32
    %c0_i32_0 = arith.constant 0 : i32
    return %arg0, %arg1, %c0_i32 : i32, i32, i32
  }
  func.func @transform_8(%arg0: i32, %arg1: i32) -> (i32, i32, i32) {
    %c0_i32 = arith.constant 0 : i32
    %c0_i32_0 = arith.constant 0 : i32
    return %arg0, %arg1, %c0_i32 : i32, i32, i32
  }
}

</mosaic_0001>

<bundles_post_ra>
// kernel: tpu_custom_call.1
= control target key start
LH: loop header
LB: loop body
LE: loop exit
PB: predicated region body
PF: predicated region fallthrough
CT: control target
= control target key end

     0   :  { %s3376_s0 = inlined_call_operand.hbm [shape: f32[2,256,128], index: 0, kind: input, shape index: {}]   ;;  %s3377_s1 = inlined_call_operand.hbm [shape: f32[2,256,128], index: 1, kind: input, shape index: {}]   ;;  %s3378_s2 = inlined_call_operand.vmem [shape: f32[128,4], index: 2, kind: input, shape index: {}]   ;;  %s3379_s3 = inlined_call_operand.vmem [shape: f32[128,132], index: 3, kind: input, shape index: {}]   ;;  %s3380_s4 = inlined_call_operand.vmem [shape: f32[1,4], index: 4, kind: input, shape index: {}]   ;;  %s3381_s5 = inlined_call_operand.vmem [shape: f32[1,132], index: 5, kind: input, shape index: {}]   ;;  %s3382_s6 = inlined_call_operand.<no memory space> [shape: f32[1,1], index: 6, kind: input, shape index: {}]   ;;  %s3383_s7 = inlined_call_operand.hbm [shape: f32[2,256,128], index: 7, kind: output, shape index: {0}]   ;;  %s3384_s8 = inlined_call_operand.hbm [shape: f32[2,256,256], index: 8, kind: output, shape index: {1}]  }
   0x1   :  { %3395 = sst [smem:[#allocation21_spill]] %s3376_s0 }
   0x2   :  { %3396 = sst [smem:[#allocation22_spill]] %s3377_s1 }
   0x3   :  { %3397 = sst [smem:[#allocation23_spill]] %s3378_s2 }
   0x4   :  { %3398 = sst [smem:[#allocation24_spill]] %s3383_s7 }
   0x5   :  { %3399 = sst [smem:[#allocation25_spill]] %s3384_s8 }
   0x6   :  { %14 = sst [smem:[#allocation2]] %s3382_s6 }
   0x7   :  { %15 = vsyncpa [#allocation4], 0 }
   0x8   :  { %17 = vsyncpa [#allocation4 + $0x1], 0 }
   0x9   :  { %18 = vsyncpa [#allocation7], 0 }
   0xa   :  { %20 = vsyncpa [#allocation7 + $0x1], 0 }
   0xb   :  { %21 = vsyncpa [#allocation5], 0 }
   0xc   :  { %23 = vsyncpa [#allocation5 + $0x1], 0 }
   0xd   :  { %24 = vsyncpa [#allocation10], 0 }
   0xe   :  { %26 = vsyncpa [#allocation10 + $0x1], 0  ;;  %s2213_s29 = smov 0   ;;  %s2215_s30 = smov 0  }
   0xf   :  { %s2217_s9 = smov 0   ;;  %s2219_s10 = smov 0  }
  0x10   :  { %s2221_s11 = smov 0   ;;  %s2223_s12 = smov 0  }
  0x11   :  { %s2225_s6 = smov 0   ;;  %s2227_s13 = smov 0  }
  0x12   :  { %s2229_s14 = smov 0   ;;  %s2231_s15 = smov 0  }
  0x13   :  { %s2233_s16 = smov 0  }
  0x14 LB: > { %3400 = sst [smem:[#allocation15_spill]] %s2129_s10  ;;  %s1639_s17 = sadd.s32 4294967295, %s2157_s16   ;;  %s2157_s16 = sphi %s2233_s16, %s32_s16   ;;  %s2153_s15 = sphi %s2231_s15, %s3435_s15   ;;  %s2149_s14 = sphi %s2229_s14, %s3434_s14   ;;  %s2145_s13 = sphi %s2227_s13, %s3433_s13   ;;  %s2141_s6 = sphi %s2225_s6, %s3432_s6   ;;  %s2137_s12 = sphi %s2223_s12, %s3431_s12   ;;  %s2133_s11 = sphi %s2221_s11, %s3430_s11   ;;  %s2129_s10 = sphi %s2219_s10, %s3429_s10   ;;  %s2125_s9 = sphi %s2217_s9, %s3428_s9   ;;  %s2121_s30 = sphi %s2215_s30, %s3427_s30   ;;  %s2117_s29 = sphi %s2213_s29, %s3426_s29  }
  0x15   : > { %3401 = sst [smem:[#allocation16_spill]] %s2145_s13  ;;  %s1640_s18 = sadd.s32 4294967294, %s2157_s16  }
  0x16   : > { %s41_s19 = sadd.s32 1, %s2149_s14  ;;  %s44_s20 = sadd.s32 1, %s2153_s15 }
  0x17   : > { %p42_p0 = scmp.ge.s32.totalorder %s41_s19, 2  ;;  %s53_s21 = sadd.s32 1, %s2137_s12 }
  0x18   : > { %p60_p1 = scmp.ne.s32.totalorder %s2137_s12, %s2133_s11  ;;  %p61_p2 = scmp.eq.s32.totalorder %s2157_s16, 0 }
  0x19   : > { %s3437_s19 = smov (%p42_p0, %s41_s19), 0  ;;  %s3439_s20 = smov (!%p42_p0, %s44_s20), %s2153_s15 }
  0x1a   : > { %3402 = sst [smem:[#allocation17_spill]] %s3437_s19  ;;  %s49_s22 = ssub.s32 %s2149_s14, %s3437_s19 }
  0x1b   : > { %p2283_p3 = por %p61_p2, %p60_p1  ;;  %p46_p4 = scmp.ge.s32.totalorder %s3439_s20, 2 }
  0x1c   : > { %p66_p5 = scmp.ne.s32.totalorder %s2133_s11, %s2129_s10  ;;  %p2289_p6 = scmp.eq.s32.totalorder %s1639_s17, 0 }
  0x1d   : > { %p223_p7 = scmp.eq.s32.totalorder %s1639_s17, 3  ;;  %s3441_s20 = smov (%p46_p4, %s3439_s20), 0 }
  0x1e   : > { %3405 = sst [smem:[#allocation18_spill]] %s3441_s20  ;;  %p2297_p8 = por %p2289_p6, %p66_p5 }
  0x1f   : > { %p2301_p9 = por %p223_p7, %p60_p1  ;;  %s2307_s27 = ssub.s32 %s2153_s15, %s3441_s20 }
  0x20   : > { %p229_p10 = scmp.eq.s32.totalorder %s1640_s18, 3  ;;  %s50_s28 = sor.u32 %s49_s22, %s2307_s27 }
  0x21   : > { %s3407_s26 = scalar_select %p2301_p9, 1, 0 }
  0x22   : > { %p77_p11 = scmp.eq.s32.totalorder %s2307_s27, 0  ;;  %p51_p12 = scmp.eq.s32.totalorder %s50_s28, 0 }
  0x23   : > { %3408 = sst [smem:[#allocation19_spill]] %s3407_s26  ;;  %p2311_p13 = por %p229_p10, %p66_p5 }
  0x24   : > { %p3394_p0 = scmp.lt.s32.totalorder %s2157_s16, 4  ;;  %s292_s10 = sand.u32 1, %s2137_s12  }
  0x25   : > { %s3409_s17 = scalar_select %p2311_p13, 1, 0 }
  0x26   : > { %s2317_s19 = scalar_select %p51_p12, %s2137_s12, %s53_s21  }
  0x27   : > { %3410 = sst [smem:[#allocation20_spill]] %s3409_s17  ;;  %s1644_s7 = sshll.u32 %s2149_s14, 4 }
  0x28   : > { %s1643_s20 = sshll.u32 %s292_s10, 7  ;;  %s1645_s26 = sshll.u32 %s2153_s15, 5 }
  0x29   : > { %s301_s8 = sadd.s32 %s1645_s26, %s1644_s7  ;;  %s296_s18 = scalar_lea.vmem [#allocation3], %s1643_s20 }
  0x2a   : > { %s306_s22 = sshll.u32 %s296_s18, 4  ;;  %s1646_s28 = sshll.u32 %s301_s8, 3  ;;  %s307_s22 = int_to_ptr.vmem [resolvable:$true] %s306_s22 }
  0x2b   : > { %s3411_s0 = sld [smem:[#allocation21_spill]]  ;;  %p1717_p1 = pnand %p3394_p0, %p2283_p3 }
  0x2c   : > { %p1650_p4 = scmp.ge.s32.totalorder %s2157_s16, 1  ;;  %s293_s20 = scalar_lea.sflag [#allocation4], %s292_s10 }
  0x2d   : > { %s2159_s26 = smov 128   ;;  %s2160_s8 = smov 8  }
  0x2e   : > { %p336_p5 = scmp.lt.s32.totalorder %s2157_s16, 5  ;;  %s79_s13 = sadd.s32 1, %s2125_s9 }
  0x2f   : > { %p86_p10 = scmp.ne.s32.totalorder %s2125_s9, %s2121_s30  ;;  %p92_p12 = scmp.ne.s32.totalorder %s2121_s30, %s2117_s29 }
  0x30   : > { %p2331_p7 = pnand %p1650_p4, %p336_p5  ;;  %s316_s17 = sand.u32 1, %s2125_s9  }
  0x31   : > { %s303_s21 = scalar_lea.hbm %s3411_s0, %s1646_s28  ;;  %p88_p3 = por %p86_p10, %p61_p2 }
  0x32   : > { %s304_s7 = sshll.u32 %s303_s21, 4  ;;  %s1682_s28 = sshll.u32 %s2153_s15, 8  ;;  %s305_s7 = int_to_ptr.hbm [resolvable:$true] %s304_s7 }
  0x33   : > { %1719 = dma.hbm_to_vmem [thread:$0]  (!%p1717_p1), %s305_s7, 2048, %s307_s22, %s293_s20, %s2159_s26, %s2159_s26, %s2160_s8  }
  0x34   : > { %s2341_s23 = scalar_select %p77_p11, %s2125_s9, %s79_s13  }
  0x35   : > { %p2351_p0 = por %p92_p12, %p2289_p6  ;;  %s1647_s22 = sshll.u32 %s316_s17, 8 }
  0x36   : > { %s3414_s1 = sld [smem:[#allocation22_spill]]  ;;  %s320_s27 = scalar_lea.vmem [#allocation6], %s1647_s22 }
  0x37   : > { %s328_s13 = sshll.u32 %s320_s27, 4  ;;  %p3415_p11 = scmp.lt.s32.totalorder %s2157_s16, 4  ;;  %s329_s13 = int_to_ptr.vmem [resolvable:$true] %s328_s13 }
  0x38   : > { %s317_s29 = scalar_lea.sflag [#allocation7], %s316_s17  ;;  %s2363_s24 = sand.u32 (!%p2331_p7), 1, %s2133_s11  }
  0x39   : > { %p1720_p2 = pnand %p3415_p11, %p88_p3  ;;  %s343_s21 = scalar_lea.sflag (!%p2331_p7), [#allocation4], %s2363_s24 }
  0x3a   : > { %340 = sbr.rel (%p2331_p7) target bundleno = 1115 (0x45b), region = 48 }
  0x3c   : > { %s325_s20 = scalar_lea.hbm %s3414_s1, %s1682_s28  ;;  %s1651_s28 = sshll.u32 (!%p2331_p7), %s2363_s24, 7 }
  0x3d   : > { %s326_s0 = sshll.u32 %s325_s20, 4  ;;  %s2369_s22 = scalar_lea.vmem (!%p2331_p7), [#allocation3], %s1651_s28  ;;  %s327_s0 = int_to_ptr.hbm [resolvable:$true] %s326_s0 }
  0x3e   : > { %1722 = dma.hbm_to_vmem [thread:$0]  (!%p1720_p2), %s327_s0, 4096, %s329_s13, %s317_s29, %s2159_s26, %s2159_s26, %s2160_s8  }
  0x3f   : > { %2100 = dma.done.wait (%p2297_p8), %s343_s21, 2048  }
  0x40   : > { %2102 = vsyncadd (%p2297_p8), %s343_s21, 4294965248  ;;  %s352_s0 = sand.u32 1, %s2121_s30  }
  0x41   : > { %s1652_s26 = sshll.u32 %s352_s0, 8  ;;  %s353_s8 = scalar_lea.sflag [#allocation7], %s352_s0 }
  0x42   : > { %s2376_s18 = scalar_lea.vmem [#allocation6], %s1652_s26 }
  0x43   : > { %2104 = dma.done.wait (%p2351_p0), %s353_s8, 4096  }
  0x44   : > { %2106 = vsyncadd (%p2351_p0), %s353_s8, 4294963200  ;;  %s3416_s2 = sld [smem:[#allocation23_spill]]  ;;  %v581_v23 = vld [vmem:[%s3379_s3 + $0xe8] sm:$0xff]  ;;  %v583_v24 = vld [vmem:[%s3379_s3 + $0xf8] sm:$0xff]  ;;  %vm808_vm0 = vcmask 31744   ;;  %s3195_s29 = scalar_lea.vmem [#allocation8], %s1651_s28 }
  0x45   : > { %v415_v26 = vld [vmem:[%s2369_s22 + $0x60] sm:$0xff]  ;;  %v416_v27 = vld [vmem:[%s2369_s22 + $0x68] sm:$0xff]  ;;  %v599_v28 = vpack.c.bf16 %v583_v24, %v581_v23  ;;  %v579_v30 = vld [vmem:[%s3379_s3 + $0xd8] sm:$0xff]  ;;  %s1317_s13 = sld [smem:[#allocation2]]  ;;  %s1683_s21 = sshll.u32 %s2141_s6, 5 }
  0x46   : > { %v577_v29 = vld [vmem:[%s3379_s3 + $0xc8] sm:$0xff]  ;;  %v457_v31 = vpack.c.bf16 %v416_v27, %v415_v26  ;;  %v575_v34 = vld [vmem:[%s3379_s3 + $0xb8] sm:$0xff]  ;;  %v417_v41 = vld [vmem:[%s2369_s22 + $0x70] sm:$0xff]  ;;  %s3417_s28 = sld [smem:[#allocation16_spill]] }
  0x47   : > { %v597_v32 = vpack.c.bf16 %v579_v30, %v577_v29  ;;  %v573_v33 = vld [vmem:[%s3379_s3 + $0xa8] sm:$0xff]  ;;  %v571_v37 = vld [vmem:[%s3379_s3 + $0x98] sm:$0xff]  ;;  %v419_v54 = vld [vmem:[%s2376_s18] sm:$0xff]  ;;  %s3418_s7 = sld [smem:[#allocation25_spill]] }
  0x48   : > { %v595_v35 = vpack.c.bf16 %v575_v34, %v573_v33  ;;  %v569_v36 = vld [vmem:[%s3379_s3 + $0x88] sm:$0xff]  ;;  %v567_v40 = vld [vmem:[%s3379_s3 + $0x78] sm:$0xff]  ;;  %v421_v57 = vld [vmem:[%s2376_s18 + $0x10] sm:$0xff] }
  0x49   : > { %v593_v38 = vpack.c.bf16 %v571_v37, %v569_v36  ;;  %v565_v39 = vld [vmem:[%s3379_s3 + $0x68] sm:$0xff]  ;;  %v418_v42 = vld [vmem:[%s2369_s22 + $0x78] sm:$0xff]  ;;  %v423_v60 = vld [vmem:[%s2376_s18 + $0x20] sm:$0xff] }
  0x4a   : > { %v489_v0 = vld [vmem:[%s3416_s2 + $0x70] sm:$0xff]  ;;  %v490_v1 = vld [vmem:[%s3416_s2 + $0x78] sm:$0xff]  ;;  %v487_v2 = vld [vmem:[%s3416_s2 + $0x60] sm:$0xff]  ;;  %v591_v43 = vpack.c.bf16 %v567_v40, %v565_v39  ;;  %v458_v46 = vpack.c.bf16 %v418_v42, %v417_v41 }
  0x4b   : > { %v498_v3 = vpack.c.bf16 %v490_v1, %v489_v0  ;;  %v488_v4 = vld [vmem:[%s3416_s2 + $0x68] sm:$0xff]  ;;  %v485_v6 = vld [vmem:[%s3416_s2 + $0x50] sm:$0xff]  ;;  %v486_v7 = vld [vmem:[%s3416_s2 + $0x58] sm:$0xff] }
  0x4c   : > { %v497_v5 = vpack.c.bf16 %v488_v4, %v487_v2  ;;  %v496_v8 = vpack.c.bf16 %v486_v7, %v485_v6  ;;  %v483_v9 = vld [vmem:[%s3416_s2 + $0x40] sm:$0xff]  ;;  %v484_v10 = vld [vmem:[%s3416_s2 + $0x48] sm:$0xff]  ;;  %v481_v12 = vld [vmem:[%s3416_s2 + $0x30] sm:$0xff]  ;;  %s1678_s10 = sshll.u32 %s3417_s28, 6 }
  0x4d   : > { %1685 = vmatpush.bf16.msra.mxu2 %v498_v3  ;;  %1684 = vmatpush.bf16.msra.mxu1 %v498_v3  ;;  %v495_v11 = vpack.c.bf16 %v484_v10, %v483_v9  ;;  %v482_v13 = vld [vmem:[%s3416_s2 + $0x38] sm:$0xff]  ;;  %v479_v15 = vld [vmem:[%s3416_s2 + $0x20] sm:$0xff]  ;;  %v480_v16 = vld [vmem:[%s3416_s2 + $0x28] sm:$0xff]  ;;  %s1484_s0 = sadd.s32 %s1683_s21, %s1678_s10  ;;  %s1453_s21 = scalar_lea.sflag [#allocation10], %s2363_s24 }
  0x4e   : > { %503 = vmatpush.bf16.msra.mxu0 %v498_v3  ;;  %v494_v14 = vpack.c.bf16 %v482_v13, %v481_v12  ;;  %v493_v17 = vpack.c.bf16 %v480_v16, %v479_v15  ;;  %v477_v18 = vld [vmem:[%s3416_s2 + $0x10] sm:$0xff]  ;;  %v478_v19 = vld [vmem:[%s3416_s2 + $0x18] sm:$0xff]  ;;  %v475_v21 = vld [vmem:[%s3416_s2] sm:$0xff]  ;;  %s1679_s26 = sshll.u32 %s1484_s0, 3  ;;  %s2019_s17 = scalar_lea.hbm %s3418_s7, 1024 }
  0x4f   : > { %v492_v20 = vpack.c.bf16 %v478_v19, %v477_v18  ;;  %v476_v22 = vld [vmem:[%s3416_s2 + $0x8] sm:$0xff]  ;;  %v563_v45 = vld [vmem:[%s3379_s3 + $0x58] sm:$0xff]  ;;  %v425_v63 = vld [vmem:[%s2376_s18 + $0x30] sm:$0xff]  ;;  %s1486_s20 = scalar_lea.hbm %s3418_s7, %s1679_s26 }
  0x50   : > { %v491_v25 = vpack.c.bf16 %v476_v22, %v475_v21  ;;  %v561_v44 = vld [vmem:[%s3379_s3 + $0x48] sm:$0xff]  ;;  %v559_v49 = vld [vmem:[%s3379_s3 + $0x38] sm:$0xff]  ;;  %v427_v2 = vld [vmem:[%s2376_s18 + $0x40] sm:$0xff] }
  0x51   : > { %1687 = vmatpush.bf16.msra.mxu2 %v497_v5  ;;  %1686 = vmatpush.bf16.msra.mxu1 %v497_v5  ;;  %v589_v47 = vpack.c.bf16 %v563_v45, %v561_v44  ;;  %v557_v48 = vld [vmem:[%s3379_s3 + $0x28] sm:$0xff]  ;;  %v555_v52 = vld [vmem:[%s3379_s3 + $0x18] sm:$0xff]  ;;  %v582_v15 = vld [vmem:[%s3379_s3 + $0xf0] sm:$0xff] }
  0x52   : > { %504 = vmatpush.bf16.msra.mxu0 %v497_v5  ;;  %v587_v50 = vpack.c.bf16 %v559_v49, %v557_v48  ;;  %v553_v51 = vld [vmem:[%s3379_s3 + $0x8] sm:$0xff]  ;;  %v422_v58 = vld [vmem:[%s2376_s18 + $0x18] sm:$0xff]  ;;  %v429_v5 = vld [vmem:[%s2376_s18 + $0x50] sm:$0xff] }
  0x53   : > { %v585_v53 = vpack.c.bf16 %v555_v52, %v553_v51  ;;  %v420_v55 = vld [vmem:[%s2376_s18 + $0x8] sm:$0xff]  ;;  %v2489_v59 = vpack.c.bf16 %v422_v58, %v421_v57  ;;  %v426_v0 = vld [vmem:[%s2376_s18 + $0x38] sm:$0xff]  ;;  %v576_v18 = vld [vmem:[%s3379_s3 + $0xc0] sm:$0xff] }
  0x54   : > { %v2484_v56 = vpack.c.bf16 %v420_v55, %v419_v54  ;;  %v424_v61 = vld [vmem:[%s2376_s18 + $0x28] sm:$0xff]  ;;  %v2499_v1 = vpack.c.bf16 %v426_v0, %v425_v63  ;;  %v430_v6 = vld [vmem:[%s2376_s18 + $0x58] sm:$0xff]  ;;  %v578_v19 = vld [vmem:[%s3379_s3 + $0xd0] sm:$0xff] }
  0x55   : > { %1689 = vmatpush.bf16.msra.mxu2 %v496_v8  ;;  %1688 = vmatpush.bf16.msra.mxu1 %v496_v8  ;;  %v2494_v62 = vpack.c.bf16 %v424_v61, %v423_v60  ;;  %v428_v3 = vld [vmem:[%s2376_s18 + $0x48] sm:$0xff]  ;;  %v2509_v7 = vpack.c.bf16 %v430_v6, %v429_v5  ;;  %v2534_v21 = vld [vmem:[%s3380_s4] ss:$0 sm:$0xff]  ;;  %v574_v23 = vld [vmem:[%s3379_s3 + $0xb0] sm:$0xff] }
  0x56   : > { %505 = vmatpush.bf16.msra.mxu0 %v496_v8  ;;  %v2504_v4 = vpack.c.bf16 %v428_v3, %v427_v2  ;;  %v431_v8 = vld [vmem:[%s2376_s18 + $0x60] sm:$0xff]  ;;  %v432_v9 = vld [vmem:[%s2376_s18 + $0x68] sm:$0xff]  ;;  %v433_v24 = vld [vmem:[%s2376_s18 + $0x70] sm:$0xff] }
  0x57   : > { %v2514_v10 = vpack.c.bf16 %v432_v9, %v431_v8  ;;  %v412_v12 = vld [vmem:[%s2369_s22 + $0x48] sm:$0xff]  ;;  %v572_v22 = vld [vmem:[%s3379_s3 + $0xa0] sm:$0xff]  ;;  %v414_v36 = vld [vmem:[%s2369_s22 + $0x58] sm:$0xff] }
  0x58   : > { %v594_v26 = vpack.c.bf16 %v574_v23, %v572_v22  ;;  %v566_v39 = vld [vmem:[%s3379_s3 + $0x70] sm:$0xff]  ;;  %v560_v42 = vld [vmem:[%s3379_s3 + $0x40] sm:$0xff]  ;;  %v436_v48 = vld [vmem:[%s2376_s18 + $0x88] sm:$0xff] }
  0x59   : > { %1691 = vmatpush.bf16.msra.mxu2 %v495_v11  ;;  %1690 = vmatpush.bf16.msra.mxu1 %v495_v11  ;;  %v556_v45 = vld [vmem:[%s3379_s3 + $0x20] sm:$0xff]  ;;  %v554_v55 = vld [vmem:[%s3379_s3 + $0x10] sm:$0xff]  ;;  %v438_v2 = vld [vmem:[%s2376_s18 + $0x98] sm:$0xff] }
  0x5a   : > { %506 = vmatpush.bf16.msra.mxu0 %v495_v11  ;;  %v411_v11 = vld [vmem:[%s2369_s22 + $0x40] sm:$0xff]  ;;  %v437_v0 = vld [vmem:[%s2376_s18 + $0x90] sm:$0xff]  ;;  %v406_v23 = vld [vmem:[%s2369_s22 + $0x18] sm:$0xff] }
  0x5b   : > { %v455_v13 = vpack.c.bf16 %v412_v12, %v411_v11  ;;  %v552_v54 = vld [vmem:[%s3379_s3] sm:$0xff]  ;;  %v404_v12 = vld [vmem:[%s2369_s22 + $0x8] sm:$0xff]  ;;  %v405_v22 = vld [vmem:[%s2369_s22 + $0x10] sm:$0xff] }
  0x5c   : > { %v584_v58 = vpack.c.bf16 %v554_v55, %v552_v54  ;;  %v2596_v61 = vld [vmem:[%s3381_s5] sm:$0x3]  ;;  %v448_v54 = vld [vmem:[%s2376_s18 + $0xe8] sm:$0xff] }
  0x5d   : > { %1693 = vmatpush.bf16.msra.mxu2 %v494_v14  ;;  %1692 = vmatpush.bf16.msra.mxu1 %v494_v14  ;;  %v2599_v63 = vperm.slane %v2596_v61, 1  ;;  %v403_v11 = vld [vmem:[%s2369_s22] sm:$0xff] }
  0x5e   : > { %507 = vmatpush.bf16.msra.mxu0 %v494_v14  ;;  %v580_v14 = vld [vmem:[%s3379_s3 + $0xe0] sm:$0xff] }
  0x5f   : > { %v598_v16 = vpack.c.bf16 %v582_v15, %v580_v14  ;;  %v439_v14 = vld [vmem:[%s2376_s18 + $0xa0] sm:$0xff]  ;;  %v440_v15 = vld [vmem:[%s2376_s18 + $0xa8] sm:$0xff] }
  0x61   : > { %1695 = vmatpush.bf16.msra.mxu2 %v493_v17  ;;  %1694 = vmatpush.bf16.msra.mxu1 %v493_v17 }
  0x62   : > { %508 = vmatpush.bf16.msra.mxu0 %v493_v17 }
  0x65   : > { %1697 = vmatpush.bf16.msra.mxu2 %v492_v20  ;;  %1696 = vmatpush.bf16.msra.mxu1 %v492_v20 }
  0x66   : > { %509 = vmatpush.bf16.msra.mxu0 %v492_v20  ;;  %v596_v20 = vpack.c.bf16 %v578_v19, %v576_v18  ;;  %v2625_v19 = vpack.c.bf16 %v440_v15, %v439_v14 }
  0x69   : > { %1699 = vmatpush.bf16.msra.mxu2 %v491_v25  ;;  %1698 = vmatpush.bf16.msra.mxu1 %v491_v25 }
  0x6a   : > { %510 = vmatpush.bf16.msra.mxu0 %v491_v25  ;;  %v434_v25 = vld [vmem:[%s2376_s18 + $0x78] sm:$0xff] }
  0x6b   : > { %v2546_v30 = vpack.c.bf16 %v434_v25, %v433_v24  ;;  %v452_v24 = vpack.c.bf16 %v406_v23, %v405_v22  ;;  %v441_v25 = vld [vmem:[%s2376_s18 + $0xb0] sm:$0xff] }
  0x6c   : > { %541 = vmatmul.bf16.vlgmr.msra.gmra.mxu2 %v457_v31  ;;  %531 = vmatmul.bf16.vlgmr.msra.gmra.mxu1 %v455_v13  ;;  %v568_v31 = vld [vmem:[%s3379_s3 + $0x80] sm:$0xff]  ;;  %v451_v13 = vpack.c.bf16 %v404_v12, %v403_v11 }
  0x6d   : > { %695 = vmatpush.bf16.msrb.mxu2 %v599_v28  ;;  %606 = vmatpush.bf16.msrb.mxu1 %v598_v16 }
  0x6e   : > { %511 = vmatmul.bf16.vlgmr.msra.gmra.mxu0 %v451_v13 }
  0x71   : > { %696 = vmatpush.bf16.msrb.mxu2 %v597_v32  ;;  %607 = vmatpush.bf16.msrb.mxu1 %v596_v20  ;;  %v570_v32 = vld [vmem:[%s3379_s3 + $0x90] sm:$0xff] }
  0x72   : > { %v592_v34 = vpack.c.bf16 %v570_v32, %v568_v31 }
  0x75   : > { %697 = vmatpush.bf16.msrb.mxu2 %v595_v35  ;;  %608 = vmatpush.bf16.msrb.mxu1 %v594_v26  ;;  %v413_v35 = vld [vmem:[%s2369_s22 + $0x50] sm:$0xff]  ;;  %v442_v26 = vld [vmem:[%s2376_s18 + $0xb8] sm:$0xff] }
  0x76   : > { %v456_v37 = vpack.c.bf16 %v414_v36, %v413_v35  ;;  %v2641_v31 = vpack.c.bf16 %v442_v26, %v441_v25  ;;  %v408_v35 = vld [vmem:[%s2369_s22 + $0x28] sm:$0xff] }
  0x79   : > { %698 = vmatpush.bf16.msrb.mxu2 %v593_v38  ;;  %609 = vmatpush.bf16.msrb.mxu1 %v592_v34  ;;  %v564_v38 = vld [vmem:[%s3379_s3 + $0x60] sm:$0xff] }
  0x7a   : > { %v590_v40 = vpack.c.bf16 %v566_v39, %v564_v38  ;;  %v407_v34 = vld [vmem:[%s2369_s22 + $0x20] sm:$0xff]  ;;  %v444_v38 = vld [vmem:[%s2376_s18 + $0xc8] sm:$0xff] }
  0x7b   : > { %v453_v36 = vpack.c.bf16 %v408_v35, %v407_v34 }
  0x7c   : > { %546 = vmatmul.bf16.gmra.mxu2 %v458_v46  ;;  %536 = vmatmul.bf16.gmra.mxu1 %v456_v37  ;;  %v558_v46 = vld [vmem:[%s3379_s3 + $0x30] sm:$0xff]  ;;  %v443_v37 = vld [vmem:[%s2376_s18 + $0xc0] sm:$0xff] }
  0x7d   : > { %699 = vmatpush.bf16.msrb.mxu2 %v591_v43  ;;  %610 = vmatpush.bf16.msrb.mxu1 %v590_v40  ;;  %v562_v43 = vld [vmem:[%s3379_s3 + $0x50] sm:$0xff]  ;;  %v586_v49 = vpack.c.bf16 %v558_v46, %v556_v45  ;;  %v410_v45 = vld [vmem:[%s2369_s22 + $0x38] sm:$0xff] }
  0x7e   : > { %v588_v44 = vpack.c.bf16 %v562_v43, %v560_v42  ;;  %516 = vmatmul.bf16.gmra.mxu0 %v452_v24  ;;  %v2657_v42 = vpack.c.bf16 %v444_v38, %v443_v37 }
  0x81   : > { %700 = vmatpush.bf16.msrb.mxu2 %v589_v47  ;;  %611 = vmatpush.bf16.msrb.mxu1 %v588_v44  ;;  %v435_v47 = vld [vmem:[%s2376_s18 + $0x80] sm:$0xff]  ;;  %v409_v44 = vld [vmem:[%s2369_s22 + $0x30] sm:$0xff] }
  0x82   : > { %v454_v46 = vpack.c.bf16 %v410_v45, %v409_v44 }
  0x85   : > { %701 = vmatpush.bf16.msrb.mxu2 %v587_v50  ;;  %612 = vmatpush.bf16.msrb.mxu1 %v586_v49 }
  0x89   : > { %702 = vmatpush.bf16.msrb.mxu2 %v585_v53  ;;  %v2581_v53 = vpack.c.bf16 %v436_v48, %v435_v47  ;;  %613 = vmatpush.bf16.msrb.mxu1 %v584_v58  ;;  %v445_v47 = vld [vmem:[%s2376_s18 + $0xd0] sm:$0xff]  ;;  %v446_v48 = vld [vmem:[%s2376_s18 + $0xd8] sm:$0xff] }
  0x8c   : > { %703 = vmatmul.bf16.vlgmr.msrb.gmra.mxu2 %v2484_v56  ;;  %614 = vmatmul.bf16.vlgmr.msrb.gmra.mxu1 %v2484_v56  ;;  %v2609_v56 = vpack.c.bf16 %v438_v2, %v437_v0  ;;  %v449_v2 = vld [vmem:[%s2376_s18 + $0xf0] sm:$0xff] }
  0x8e   : > { %521 = vmatmul.bf16.gmra.mxu0 %v453_v36 }
  0x9c   : > { %708 = vmatmul.bf16.gmra.mxu2 %v2489_v59  ;;  %619 = vmatmul.bf16.gmra.mxu1 %v2489_v59 }
  0x9e   : > { %526 = vmatmul.bf16.gmra.mxu0 %v454_v46 }
  0xac   : > { %713 = vmatmul.bf16.gmra.mxu2 %v2494_v62  ;;  %624 = vmatmul.bf16.gmra.mxu1 %v2494_v62 }
  0xbc   : > { %718 = vmatmul.bf16.gmra.mxu2 %v2499_v1  ;;  %629 = vmatmul.bf16.gmra.mxu1 %v2499_v1 }
  0xcc   : > { %723 = vmatmul.bf16.gmra.mxu2 %v2504_v4  ;;  %634 = vmatmul.bf16.gmra.mxu1 %v2504_v4 }
  0xdc   : > { %728 = vmatmul.bf16.gmra.mxu2 %v2509_v7  ;;  %639 = vmatmul.bf16.gmra.mxu1 %v2509_v7 }
  0xe9   : > { %v532_v4 = vpop.f32.mrf.mxu1 }
  0xec   : > { %733 = vmatmul.bf16.gmra.mxu2 %v2514_v10  ;;  %644 = vmatmul.bf16.gmra.mxu1 %v2514_v10 }
  0xef   : > { %v542_v17 = vpop.f32.mrf.mxu2 }
  0xf0   : > { %v543_v28 = vadd.f32 %v2534_v21, %v542_v17 }
  0xf1   : > { %v534_v0 = vpop.f32.mrf.mxu1 }
  0xf2   : > { %v535_v7 = vadd.f32 %v2534_v21, %v534_v0 }
  0xf7   : > { %v544_v27 = vpop.f32.mrf.mxu2 }
  0xf8   : > { %v545_v29 = vadd.f32 %v2534_v21, %v544_v27 }
  0xf9   : > { %v537_v14 = vpop.f32.mrf.mxu1 }
  0xfa   : > { %v2554_v33 = vpack.c.bf16 %v545_v29, %v543_v28  ;;  %v538_v10 = vadd.f32 %v2534_v21, %v537_v14 }
  0xfc   : > { %738 = vmatmul.bf16.gmra.mxu2 %v2546_v30  ;;  %649 = vmatmul.bf16.gmra.mxu1 %v2546_v30 }
  0xff   : > { %v547_v41 = vpop.f32.mrf.mxu2 }
 0x100   : > { %v548_v51 = vadd.f32 %v2534_v21, %v547_v41 }
 0x107   : > { %v549_v50 = vpop.f32.mrf.mxu2 }
 0x108   : > { %v550_v52 = vadd.f32 %v2534_v21, %v549_v50  ;;  %v2669_v50 = vpack.c.bf16 %v446_v48, %v445_v47 }
 0x10a   : > { %v2589_v57 = vpack.c.bf16 %v550_v52, %v548_v51  ;;  %v447_v52 = vld [vmem:[%s2376_s18 + $0xe0] sm:$0xff] }
 0x10b   : > { %v2675_v58 = vpack.c.bf16 %v448_v54, %v447_v52 }
 0x10c   : > { %743 = vmatmul.bf16.gmra.mxu2 %v2581_v53  ;;  %654 = vmatmul.bf16.gmra.mxu1 %v2581_v53 }
 0x10f   : > { %v704_v60 = vpop.f32.mrf.mxu2 }
 0x110   : > { %v2604_v5 = vadd.f32 %v704_v60, %v2599_v63 }
 0x117   : > { %v706_v3 = vpop.f32.mrf.mxu2 }
 0x118   : > { %v2607_v6 = vadd.f32 %v706_v3, %v2599_v63  ;;  %v450_v3 = vld [vmem:[%s2376_s18 + $0xf8] sm:$0xff]  ;;  %s1654_s18 = sshll.u32 %s2363_s24, 8 }
 0x119   : > { %v2682_v12 = vpack.c.bf16 %v450_v3, %v449_v2  ;;  %s3177_s25 = scalar_lea.vmem [#allocation9], %s1654_s18  ;;  %s1489_s18 = sshll.u32 %s1486_s20, 4  ;;  %s1490_s18 = int_to_ptr.hbm [resolvable:$true] %s1489_s18 }
 0x11a   : > { %v792_v8 = vpack.c.bf16 %v2607_v6, %v2604_v5  ;;  %s1487_s27 = sshll.u32 %s3177_s25, 4  ;;  %s2013_s10 = sshra.s32 %s1490_s18, 4  ;;  %s1488_s27 = int_to_ptr.vmem [resolvable:$true] %s1487_s27  ;;  %s2014_s10 = int_to_ptr.hbm [resolvable:$true] %s2013_s10 }
 0x11b   : > { %s2015_s0 = scalar_lea.hbm %s2014_s10, 256  ;;  %p2020_p1 = scmp.lt.s32.totalorder %s2014_s10, %s3418_s7 }
 0x11c   : > { %748 = vmatmul.bf16.gmra.mxu2 %v2609_v56  ;;  %659 = vmatmul.bf16.gmra.mxu1 %v2609_v56  ;;  %p2016_p6 = scmp.ne.s32.totalorder %s2014_s10, %s2015_s0  ;;  %p2021_p4 = scmp.lt.s32.totalorder %s2019_s17, %s2015_s0 }
 0x11e   : > { %p2017_p8 = pnand %p2016_p6, %p2301_p9  ;;  %p2022_p5 = por %p2021_p4, %p2020_p1 }
 0x11f   : > { %v709_v9 = vpop.f32.mrf.mxu2 }
 0x120   : > { %v2620_v17 = vadd.f32 %v709_v9, %v2599_v63  ;;  %v533_v9 = vadd.f32 %v2534_v21, %v532_v4  ;;  %p2018_p0 = pneg %p2017_p8 }
 0x122   : > { %v2685_v13 = vpack.c.bf16 %v535_v7, %v533_v9  ;;  %p2023_p7 = pnand %p2022_p5, %p2018_p0 }
 0x127   : > { %v711_v16 = vpop.f32.mrf.mxu2 }
 0x128   : > { %v2623_v18 = vadd.f32 %v711_v16, %v2599_v63  ;;  %v539_v16 = vpop.f32.mrf.mxu1 }
 0x129   : > { %v540_v24 = vadd.f32 %v2534_v21, %v539_v16 }
 0x12a   : > { %v793_v20 = vpack.c.bf16 %v2623_v18, %v2620_v17 }
 0x12b   : > { %v2693_v26 = vpack.c.bf16 %v540_v24, %v538_v10 }
 0x12c   : > { %753 = vmatmul.bf16.gmra.mxu2 %v2625_v19  ;;  %664 = vmatmul.bf16.gmra.mxu1 %v2625_v19  ;;  %v837_v19 = vsel %vm808_vm0, %v793_v20, 0 }
 0x12f   : > { %v714_v59 = vpop.f32.mrf.mxu2 }
 0x130   : > { %v2636_v28 = vadd.f32 %v714_v59, %v2599_v63  ;;  %v2697_v34 = vpop.f32.mrf.mxu1 }
 0x137   : > { %v716_v27 = vpop.f32.mrf.mxu2 }
 0x138   : > { %v2639_v29 = vadd.f32 %v716_v27, %v2599_v63 }
 0x13a   : > { %v794_v32 = vpack.c.bf16 %v2639_v29, %v2636_v28 }
 0x13c   : > { %758 = vmatmul.bf16.gmra.mxu2 %v2641_v31  ;;  %669 = vmatmul.bf16.gmra.mxu1 %v2641_v31 }
 0x13f   : > { %v719_v62 = vpop.f32.mrf.mxu2 }
 0x140   : > { %v2652_v40 = vadd.f32 %v719_v62, %v2599_v63 }
 0x147   : > { %v721_v39 = vpop.f32.mrf.mxu2 }
 0x148   : > { %v2655_v41 = vadd.f32 %v721_v39, %v2599_v63  ;;  %v2703_v39 = vpop.f32.mrf.mxu1 }
 0x14a   : > { %v795_v43 = vpack.c.bf16 %v2655_v41, %v2652_v40 }
 0x14c   : > { %763 = vmatmul.bf16.gmra.mxu2 %v2657_v42  ;;  %v843_v56 = vsel %vm808_vm0, %v795_v43, 0  ;;  %674 = vmatmul.bf16.gmra.mxu1 %v2657_v42 }
 0x14f   : > { %v2662_v1 = vpop.f32.mrf.mxu2 }
 0x157   : > { %v726_v49 = vpop.f32.mrf.mxu2 }
 0x158   : > { %v727_v52 = vadd.f32 %v726_v49, %v2599_v63 }
 0x15c   : > { %768 = vmatmul.bf16.gmra.mxu2 %v2669_v50 }
 0x15f   : > { %v729_v51 = vpop.f32.mrf.mxu2 }
 0x160   : > { %v730_v44 = vadd.f32 %v729_v51, %v2599_v63  ;;  %v725_v51 = vadd.f32 %v2662_v1, %v2599_v63  ;;  %v512_v1 = vpop.f32.mrf.mxu0 }
 0x167   : > { %v731_v55 = vpop.f32.mrf.mxu2 }
 0x168   : > { %v732_v37 = vadd.f32 %v731_v55, %v2599_v63  ;;  %v2716_v55 = vpop.f32.mrf.mxu1  ;;  %v514_v10 = vpop.f32.mrf.mxu0 }
 0x169   : > { %v515_v24 = vadd.f32 %v2534_v21, %v514_v10 }
 0x16a   : > { %v797_v48 = vpack.c.bf16 %v732_v37, %v730_v44 }
 0x16c   : > { %773 = vmatmul.bf16.gmra.mxu2 %v2675_v58  ;;  %v849_v54 = vsel %vm808_vm0, %v797_v48, 0 }
 0x16f   : > { %v734_v60 = vpop.f32.mrf.mxu2 }
 0x170   : > { %v735_v30 = vadd.f32 %v734_v60, %v2599_v63  ;;  %v796_v60 = vpack.c.bf16 %v727_v52, %v725_v51  ;;  %v2722_v2 = vpop.f32.mrf.mxu1  ;;  %679 = vmatmul.bf16.gmra.mxu1 %v2669_v50 }
 0x172   : > { %v846_v0 = vsel %vm808_vm0, %v796_v60, 0 }
 0x177   : > { %v736_v11 = vpop.f32.mrf.mxu2 }
 0x178   : > { %v737_v27 = vadd.f32 %v736_v11, %v2599_v63  ;;  %v2736_v7 = vpop.f32.mrf.mxu1 }
 0x17a   : > { %v798_v36 = vpack.c.bf16 %v737_v27, %v735_v30 }
 0x17c   : > { %778 = vmatmul.bf16.gmra.mxu2 %v2682_v12  ;;  %v852_v38 = vsel %vm808_vm0, %v798_v36, 0 }
 0x17f   : > { %v739_v15 = vpop.f32.mrf.mxu2 }
 0x180   : > { %v740_v22 = vadd.f32 %v739_v15, %v2599_v63  ;;  %v840_v15 = vsel %vm808_vm0, %v794_v32, 0  ;;  %v2743_v16 = vpop.f32.mrf.mxu1  ;;  %v517_v32 = vpop.f32.mrf.mxu0  ;;  %684 = vmatmul.bf16.gmra.mxu1 %v2675_v58 }
 0x181   : > { %v518_v30 = vadd.f32 %v2534_v21, %v517_v32 }
 0x187   : > { %v741_v59 = vpop.f32.mrf.mxu2 }
 0x188   : > { %v742_v23 = vadd.f32 %v741_v59, %v2599_v63  ;;  %v2757_v28 = vpop.f32.mrf.mxu1  ;;  %v519_v27 = vpop.f32.mrf.mxu0 }
 0x18a   : > { %v799_v25 = vpack.c.bf16 %v742_v23, %v740_v22  ;;  %v513_v22 = vadd.f32 %v2534_v21, %v512_v1  ;;  %v834_v23 = vsel %vm808_vm0, %v792_v8, 0 }
 0x18c   : > { %v855_v62 = vsel %vm808_vm0, %v799_v25, 0  ;;  %v2771_v20 = vpack.c.bf16 %v515_v24, %v513_v22  ;;  %v2810_v22 = vperm.slane %v2596_v61, 0 }
 0x18d   : > { %881 = vmatpush.bf16.xpose.msra.mxu3 %v855_v62 }
 0x18f   : > { %v744_v35 = vpop.f32.mrf.mxu2 }
 0x190   : > { %v2707_v46 = vadd.f32 %v744_v35, %v2599_v63  ;;  %v2766_v25 = vpop.f32.mrf.mxu1  ;;  %v522_v62 = vpop.f32.mrf.mxu0  ;;  %v520_v35 = vadd.f32 %v2534_v21, %v519_v27  ;;  %689 = vmatmul.bf16.gmra.mxu1 %v2682_v12 }
 0x191   : > { %v523_v51 = vadd.f32 %v2534_v21, %v522_v62 }
 0x192   : > { %v2786_v44 = vpack.c.bf16 %v520_v35, %v518_v30 }
 0x195   : > { %882 = vmatpush.bf16.xpose.msra.mxu3 %v852_v38 }
 0x197   : > { %v746_v45 = vpop.f32.mrf.mxu2 }
 0x198   : > { %v2710_v47 = vadd.f32 %v746_v45, %v2599_v63  ;;  %v635_v6 = vpop.f32.mrf.mxu1  ;;  %v524_v52 = vpop.f32.mrf.mxu0 }
 0x19a   : > { %v800_v53 = vpack.c.bf16 %v2710_v47, %v2707_v46 }
 0x19d   : > { %883 = vmatpush.bf16.xpose.msra.mxu3 %v849_v54 }
 0x19f   : > { %v749_v4 = vpop.f32.mrf.mxu2 }
 0x1a0   : > { %v2725_v49 = vadd.f32 %v749_v4, %v2599_v63  ;;  %v637_v36 = vpop.f32.mrf.mxu1  ;;  %v525_v4 = vadd.f32 %v2534_v21, %v524_v52 }
 0x1a2   : > { %v2798_v1 = vpack.c.bf16 %v525_v4, %v523_v51 }
 0x1a5   : > { %884 = vmatpush.bf16.xpose.msra.mxu3 %v846_v0 }
 0x1a7   : > { %v751_v3 = vpop.f32.mrf.mxu2 }
 0x1a8   : > { %v2728_v9 = vadd.f32 %v751_v3, %v2599_v63  ;;  %v640_v42 = vpop.f32.mrf.mxu1  ;;  %v527_v3 = vpop.f32.mrf.mxu0 }
 0x1a9   : > { %v528_v10 = vadd.f32 %v2534_v21, %v527_v3  ;;  %v641_v61 = vadd.f32 %v640_v42, %v2810_v22  ;;  %v638_v42 = vadd.f32 %v637_v36, %v2810_v22 }
 0x1aa   : > { %v801_v11 = vpack.c.bf16 %v2728_v9, %v2725_v49 }
 0x1ad   : > { %885 = vmatpush.bf16.xpose.msra.mxu3 %v843_v56 }
 0x1af   : > { %v754_v14 = vpop.f32.mrf.mxu2 }
 0x1b0   : > { %v2746_v40 = vadd.f32 %v754_v14, %v2599_v63  ;;  %v642_v60 = vpop.f32.mrf.mxu1 }
 0x1b1   : > { %v643_v12 = vadd.f32 %v642_v60, %v2810_v22 }
 0x1b3   : > { %v1208_v60 = vpack.c.bf16 %v643_v12, %v641_v61 }
 0x1b5   : > { %886 = vmatpush.bf16.xpose.msra.mxu3 %v840_v15  ;;  %v529_v15 = vpop.f32.mrf.mxu0 }
 0x1b6   : > { %v530_v50 = vadd.f32 %v2534_v21, %v529_v15  ;;  %v636_v15 = vadd.f32 %v635_v6, %v2810_v22 }
 0x1b7   : > { %v756_v59 = vpop.f32.mrf.mxu2 }
 0x1b8   : > { %v2749_v41 = vadd.f32 %v756_v59, %v2599_v63  ;;  %v645_v56 = vpop.f32.mrf.mxu1 }
 0x1b9   : > { %v646_v21 = vadd.f32 %v645_v56, %v2810_v22 }
 0x1ba   : > { %v802_v43 = vpack.c.bf16 %v2749_v41, %v2746_v40  ;;  %v858_v40 = vsel %vm808_vm0, %v800_v53, 0 }
 0x1bd   : > { %887 = vmatpush.bf16.xpose.msra.mxu3 %v837_v19 }
 0x1bf   : > { %v759_v29 = vpop.f32.mrf.mxu2 }
 0x1c0   : > { %v2769_v18 = vadd.f32 %v759_v29, %v2599_v63  ;;  %v647_v59 = vpop.f32.mrf.mxu1  ;;  %v2805_v29 = vpack.c.bf16 %v530_v50, %v528_v10  ;;  %v631_v50 = vadd.f32 %v2757_v28, %v2810_v22  ;;  %v626_v28 = vadd.f32 %v2736_v7, %v2810_v22 }
 0x1c1   : > { %v648_v27 = vadd.f32 %v647_v59, %v2810_v22  ;;  %v633_v59 = vadd.f32 %v2766_v25, %v2810_v22  ;;  %v628_v25 = vadd.f32 %v2743_v16, %v2810_v22  ;;  %v616_v16 = vadd.f32 %v2697_v34, %v2810_v22 }
 0x1c3   : > { %v1209_v52 = vpack.c.bf16 %v648_v27, %v646_v21  ;;  %v621_v21 = vadd.f32 %v2716_v55, %v2810_v22  ;;  %v623_v27 = vadd.f32 %v2722_v2, %v2810_v22 }
 0x1c5   : > { %888 = vmatpush.bf16.xpose.msra.mxu3 %v834_v23  ;;  %v1204_v55 = vpack.c.bf16 %v623_v27, %v621_v21 }
 0x1c7   : > { %v761_v17 = vpop.f32.mrf.mxu2 }
 0x1c8   : > { %v2774_v31 = vadd.f32 %v761_v17, %v2599_v63  ;;  %v650_v32 = vpop.f32.mrf.mxu1 }
 0x1c9   : > { %v651_v58 = vadd.f32 %v650_v32, %v2810_v22 }
 0x1ca   : > { %v803_v5 = vpack.c.bf16 %v2774_v31, %v2769_v18  ;;  %v861_v18 = vsel %vm808_vm0, %v801_v11, 0 }
 0x1cc   : > { %1655 = vmatmul.msk.bf16.vlgmr.msra.gmra.mxu3 %vm808_vm0, %v2771_v20  ;;  %v867_v61 = vsel %vm808_vm0, %v803_v5, 0 }
 0x1cf   : > { %v764_v8 = vpop.f32.mrf.mxu2 }
 0x1d0   : > { %v2784_v38 = vadd.f32 %v764_v8, %v2599_v63  ;;  %v652_v24 = vpop.f32.mrf.mxu1 }
 0x1d1   : > { %v653_v17 = vadd.f32 %v652_v24, %v2810_v22  ;;  %v1206_v24 = vpack.c.bf16 %v633_v59, %v631_v50 }
 0x1d3   : > { %v1210_v62 = vpack.c.bf16 %v653_v17, %v651_v58 }
 0x1d5   : > { %1219 = vmatpush.bf16.msrb.mxu3 %v1210_v62 }
 0x1d7   : > { %v766_v37 = vpop.f32.mrf.mxu2 }
 0x1d8   : > { %v2789_v45 = vadd.f32 %v766_v37, %v2599_v63  ;;  %v655_v3 = vpop.f32.mrf.mxu1 }
 0x1d9   : > { %1220 = vmatpush.bf16.msrb.mxu3 %v1209_v52  ;;  %v2833_v32 = vadd.f32 %v655_v3, %v2810_v22 }
 0x1da   : > { %v804_v48 = vpack.c.bf16 %v2789_v45, %v2784_v38  ;;  %v864_v38 = vsel %vm808_vm0, %v802_v43, 0 }
 0x1dc   : > { %1656 = vmatmul.msk.bf16.gmra.mxu3 %vm808_vm0, %v2786_v44 }
 0x1dd   : > { %1221 = vmatpush.bf16.msrb.mxu3 %v1208_v60 }
 0x1df   : > { %v769_v54 = vpop.f32.mrf.mxu2 }
 0x1e0   : > { %v770_v58 = vadd.f32 %v769_v54, %v2599_v63  ;;  %v618_v54 = vadd.f32 %v2703_v39, %v2810_v22 }
 0x1e2   : > { %v1203_v2 = vpack.c.bf16 %v618_v54, %v616_v16 }
 0x1e7   : > { %v771_v0 = vpop.f32.mrf.mxu2 }
 0x1ec   : > { %1657 = vmatmul.msk.bf16.gmra.mxu3 %vm808_vm0, %v2798_v1 }
 0x1ef   : > { %v774_v14 = vpop.f32.mrf.mxu2 }
 0x1f0   : > { %v775_v56 = vadd.f32 %v774_v14, %v2599_v63  ;;  %v772_v14 = vadd.f32 %v771_v0, %v2599_v63 }
 0x1f2   : > { %v805_v17 = vpack.c.bf16 %v772_v14, %v770_v58 }
 0x1f4   : > { %v873_v7 = vsel %vm808_vm0, %v805_v17, 0 }
 0x1f7   : > { %v776_v19 = vpop.f32.mrf.mxu2 }
 0x1f8   : > { %v777_v51 = vadd.f32 %v776_v19, %v2599_v63  ;;  %v1207_v19 = vpack.c.bf16 %v638_v42, %v636_v15 }
 0x1fa   : > { %v806_v10 = vpack.c.bf16 %v777_v51, %v775_v56  ;;  %1222 = vmatpush.bf16.msrb.mxu3 %v1207_v19 }
 0x1fc   : > { %1658 = vmatmul.msk.bf16.gmra.mxu3 %vm808_vm0, %v2805_v29  ;;  %v876_v6 = vsel %vm808_vm0, %v806_v10, 0 }
 0x1fe   : > { %1223 = vmatpush.bf16.msrb.mxu3 %v1206_v24 }
 0x1ff   : > { %v779_v23 = vpop.f32.mrf.mxu2 }
 0x200   : > { %v780_v30 = vadd.f32 %v779_v23, %v2599_v63  ;;  %v657_v23 = vpop.f32.mrf.mxu1 }
 0x201   : > { %v2838_v36 = vadd.f32 %v657_v23, %v2810_v22 }
 0x203   : > { %v1211_v0 = vpack.c.bf16 %v2838_v36, %v2833_v32 }
 0x207   : > { %v781_v8 = vpop.f32.mrf.mxu2 }
 0x208   : > { %v782_v35 = vadd.f32 %v781_v8, %v2599_v63  ;;  %v1205_v8 = vpack.c.bf16 %v628_v25, %v626_v28  ;;  %v660_v63 = vpop.f32.mrf.mxu1 }
 0x209   : > { %v2859_v62 = vadd.f32 %v660_v63, %v2810_v22 }
 0x20a   : > { %v807_v37 = vpack.c.bf16 %v782_v35, %v780_v30  ;;  %1224 = vmatpush.bf16.msrb.mxu3 %v1205_v8  ;;  %v870_v30 = vsel %vm808_vm0, %v804_v48, 0 }
 0x20c   : > { %1659 = vmatmul.msk.bf16.gmra.mxu3 %vm808_vm0, %v2685_v13  ;;  %v879_v4 = vsel %vm808_vm0, %v807_v37, 0 }
 0x20d   : > { %930 = vmatpush.bf16.xpose.msrb.mxu0 %v879_v4  ;;  %1700 = vmatpush.bf16.xpose.msra.mxu2 %v879_v4 }
 0x20e   : > { %1225 = vmatpush.bf16.msrb.mxu3 %v1204_v55 }
 0x210   : > { %v662_v35 = vpop.f32.mrf.mxu1 }
 0x211   : > { %v663_v34 = vadd.f32 %v662_v35, %v2810_v22 }
 0x212   : > { %1226 = vmatpush.bf16.msrb.mxu3 %v1203_v2 }
 0x213   : > { %v1212_v39 = vpack.c.bf16 %v663_v34, %v2859_v62 }
 0x215   : > { %931 = vmatpush.bf16.xpose.msrb.mxu0 %v876_v6  ;;  %1701 = vmatpush.bf16.xpose.msra.mxu2 %v876_v6 }
 0x218   : > { %v665_v12 = vpop.f32.mrf.mxu1 }
 0x219   : > { %v666_v48 = vadd.f32 %v665_v12, %v2810_v22 }
 0x21c   : > { %1660 = vmatmul.msk.bf16.gmra.mxu3 %vm808_vm0, %v2693_v26 }
 0x21d   : > { %932 = vmatpush.bf16.xpose.msrb.mxu0 %v873_v7  ;;  %1702 = vmatpush.bf16.xpose.msra.mxu2 %v873_v7 }
 0x220   : > { %v667_v45 = vpop.f32.mrf.mxu1 }
 0x221   : > { %v668_v37 = vadd.f32 %v667_v45, %v2810_v22 }
 0x223   : > { %v1213_v52 = vpack.c.bf16 %v668_v37, %v666_v48 }
 0x225   : > { %933 = vmatpush.bf16.xpose.msrb.mxu0 %v870_v30  ;;  %1703 = vmatpush.bf16.xpose.msra.mxu2 %v870_v30 }
 0x228   : > { %v670_v31 = vpop.f32.mrf.mxu1 }
 0x229   : > { %v671_v43 = vadd.f32 %v670_v31, %v2810_v22 }
 0x22c   : > { %1661 = vmatmul.msk.bf16.gmra.mxu3 %vm808_vm0, %v2554_v33 }
 0x22d   : > { %934 = vmatpush.bf16.xpose.msrb.mxu0 %v867_v61  ;;  %1704 = vmatpush.bf16.xpose.msra.mxu2 %v867_v61 }
 0x230   : > { %v672_v41 = vpop.f32.mrf.mxu1 }
 0x231   : > { %v673_v5 = vadd.f32 %v672_v41, %v2810_v22 }
 0x233   : > { %v1214_v51 = vpack.c.bf16 %v673_v5, %v671_v43 }
 0x235   : > { %935 = vmatpush.bf16.xpose.msrb.mxu0 %v864_v38  ;;  %1705 = vmatpush.bf16.xpose.msra.mxu2 %v864_v38 }
 0x238   : > { %v675_v49 = vpop.f32.mrf.mxu1 }
 0x23c   : > { %1662 = vmatmul.msk.bf16.gmra.mxu3 %vm808_vm0, %v2589_v57 }
 0x23d   : > { %936 = vmatpush.bf16.xpose.msrb.mxu0 %v861_v18  ;;  %1706 = vmatpush.bf16.xpose.msra.mxu2 %v861_v18 }
 0x240   : > { %v677_v9 = vpop.f32.mrf.mxu1 }
 0x241   : > { %v678_v10 = vadd.f32 %v677_v9, %v2810_v22 }
 0x245   : > { %937 = vmatpush.bf16.xpose.msrb.mxu0 %v858_v40  ;;  %1707 = vmatpush.bf16.xpose.msra.mxu2 %v858_v40 }
 0x248   : > { %v680_v46 = vpop.f32.mrf.mxu1 }
 0x249   : > { %v681_v42 = vadd.f32 %v680_v46, %v2810_v22 }
 0x24c   : > { %1663 = vmatmul.msk.bf16.vlgmr.msrb.gmra.mxu0 %vm808_vm0, %v2771_v20  ;;  %1670 = vmatmul.msk.bf16.vlgmr.msra.gmra.mxu2 %vm808_vm0, %v2589_v57 }
 0x24f   : > { %v2911_v19 = vpop.f32.mrf.mxu3 }
 0x250   : > { %v682_v47 = vpop.f32.mrf.mxu1 }
 0x257   : > { %v2915_v14 = vpop.f32.mrf.mxu3 }
 0x258   : > { %v685_v53 = vpop.f32.mrf.mxu1 }
 0x259   : > { %v686_v57 = vadd.f32 %v685_v53, %v2810_v22 }
 0x25c   : > { %1664 = vmatmul.msk.bf16.gmra.mxu0 %vm808_vm0, %v2786_v44 }
 0x260   : > { %v687_v11 = vpop.f32.mrf.mxu1 }
 0x261   : > { %v688_v56 = vadd.f32 %v687_v11, %v2810_v22 }
 0x263   : > { %v1217_v60 = vpack.c.bf16 %v688_v56, %v686_v57 }
 0x268   : > { %v690_v4 = vpop.f32.mrf.mxu1 }
 0x269   : > { %v691_v20 = vadd.f32 %v690_v4, %v2810_v22 }
 0x26c   : > { %1665 = vmatmul.msk.bf16.gmra.mxu0 %vm808_vm0, %v2798_v1  ;;  %v683_v1 = vadd.f32 %v682_v47, %v2810_v22 }
 0x26e   : > { %v1216_v50 = vpack.c.bf16 %v683_v1, %v681_v42 }
 0x270   : > { %v692_v3 = vpop.f32.mrf.mxu1 }
 0x271   : > { %v693_v44 = vadd.f32 %v692_v3, %v2810_v22 }
 0x273   : > { %v1218_v15 = vpack.c.bf16 %v693_v44, %v691_v20 }
 0x275   : > { %1268 = vmatpush.bf16.msra.mxu0 %v1218_v15 }
 0x279   : > { %1269 = vmatpush.bf16.msra.mxu0 %v1217_v60 }
 0x27c   : > { %1666 = vmatmul.msk.bf16.gmra.mxu0 %vm808_vm0, %v2805_v29  ;;  %v676_v29 = vadd.f32 %v675_v49, %v2810_v22 }
 0x27d   : > { %1270 = vmatpush.bf16.msra.mxu0 %v1216_v50 }
 0x27e   : > { %v1215_v59 = vpack.c.bf16 %v678_v10, %v676_v29 }
 0x281   : > { %1271 = vmatpush.bf16.msra.mxu0 %v1215_v59 }
 0x285   : > { %1272 = vmatpush.bf16.msra.mxu0 %v1214_v51 }
 0x289   : > { %1273 = vmatpush.bf16.msra.mxu0 %v1213_v52 }
 0x28c   : > { %1667 = vmatmul.msk.bf16.gmra.mxu0 %vm808_vm0, %v2685_v13  ;;  %v2922_v13 = vpop.f32.mrf.mxu3 }
 0x28d   : > { %1274 = vmatpush.bf16.msra.mxu0 %v1212_v39 }
 0x291   : > { %1275 = vmatpush.bf16.msra.mxu0 %v1211_v0 }
 0x294   : > { %v2924_v22 = vpop.f32.mrf.mxu3 }
 0x29c   : > { %1668 = vmatmul.msk.bf16.gmra.mxu0 %vm808_vm0, %v2693_v26  ;;  %v2926_v6 = vpop.f32.mrf.mxu3 }
 0x2a4   : > { %v2932_v28 = vpop.f32.mrf.mxu3 }
 0x2ac   : > { %1669 = vmatmul.msk.bf16.gmra.mxu0 %vm808_vm0, %v2554_v33  ;;  %v2938_v33 = vpop.f32.mrf.mxu3 }
 0x2b4   : > { %v2944_v24 = vpop.f32.mrf.mxu3 }
 0x2bc   : > { %v2954_v8 = vpop.f32.mrf.mxu3 }
 0x2c4   : > { %v2960_v16 = vpop.f32.mrf.mxu3 }
 0x2c9   : > { %v2928_v23 = vpop.f32.mrf.mxu0 }
 0x2ca   : > { %v979_v26 = vmax.f32 %v2911_v19, %v2928_v23 }
 0x2cc   : > { %980 = vmax.xlane.f32.xlu0 %v979_v26  ;;  %v2966_v2 = vpop.f32.mrf.mxu3 }
 0x2cf   : > { %v2994_v31 = vpop.f32.mrf.mxu2 }
 0x2d1   : > { %v2934_v25 = vpop.f32.mrf.mxu0 }
 0x2d2   : > { %v982_v32 = vmax.f32 %v2915_v14, %v2934_v25 }
 0x2d4   : > { %983 = vmax.xlane.f32.xlu0 %v982_v32  ;;  %v2972_v35 = vpop.f32.mrf.mxu3 }
 0x2d7   : > { %v3004_v51 = vpop.f32.mrf.mxu2 }
 0x2d9   : > { %v2940_v36 = vpop.f32.mrf.mxu0 }
 0x2da   : > { %v985_v58 = vmax.f32 %v2922_v13, %v2940_v36 }
 0x2dc   : > { %986 = vmax.xlane.f32.xlu1 %v985_v58  ;;  %v2982_v38 = vpop.f32.mrf.mxu3 }
 0x2e1   : > { %v2946_v0 = vpop.f32.mrf.mxu0 }
 0x2e2   : > { %v988_v17 = vmax.f32 %v2924_v22, %v2946_v0 }
 0x2e4   : > { %989 = vmax.xlane.f32.xlu1 %v988_v17  ;;  %v2988_v37 = vpop.f32.mrf.mxu3 }
 0x2e9   : > { %v2950_v21 = vpop.f32.mrf.mxu0 }
 0x2ea   : > { %v991_v27 = vmax.f32 %v2926_v6, %v2950_v21 }
 0x2ec   : > { %992 = vmax.xlane.f32.xlu2 %v991_v27  ;;  %v2996_v40 = vpop.f32.mrf.mxu3 }
 0x2ed   : > { %v1021_v5 = vmax.f32 %v2996_v40, %v2994_v31 }
 0x2f1   : > { %v2956_v7 = vpop.f32.mrf.mxu0 }
 0x2f2   : > { %v994_v63 = vmax.f32 %v2932_v28, %v2956_v7 }
 0x2f4   : > { %995 = vmax.xlane.f32.xlu2 %v994_v63  ;;  %v3006_v49 = vpop.f32.mrf.mxu3 }
 0x2f5   : > { %v1024_v46 = vmax.f32 %v3006_v49, %v3004_v51 }
 0x2f9   : > { %v2962_v54 = vpop.f32.mrf.mxu0 }
 0x2fa   : > { %v997_v55 = vmax.f32 %v2938_v33, %v2962_v54 }
 0x2fc   : > { %998 = vmax.xlane.f32.xlu0 %v997_v55 }
 0x301   : > { %v2968_v62 = vpop.f32.mrf.mxu0 }
 0x302   : > { %v1000_v30 = vmax.f32 %v2944_v24, %v2968_v62 }
 0x304   : > { %1001 = vmax.xlane.f32.xlu1 %v1000_v30 }
 0x309   : > { %v2974_v34 = vpop.f32.mrf.mxu0 }
 0x30a   : > { %v1003_v39 = vmax.f32 %v2954_v8, %v2974_v34 }
 0x30c   : > { %1004 = vmax.xlane.f32.xlu2 %v1003_v39 }
 0x311   : > { %v2978_v61 = vpop.f32.mrf.mxu0 }
 0x312   : > { %v1006_v12 = vmax.f32 %v2960_v16, %v2978_v61 }
 0x314   : > { %1007 = vmax.xlane.f32.xlu0 %v1006_v12 }
 0x319   : > { %v2984_v45 = vpop.f32.mrf.mxu0 }
 0x31a   : > { %v1009_v48 = vmax.f32 %v2966_v2, %v2984_v45 }
 0x31c   : > { %1010 = vmax.xlane.f32.xlu1 %v1009_v48 }
 0x321   : > { %v2990_v52 = vpop.f32.mrf.mxu0 }
 0x322   : > { %v1012_v18 = vmax.f32 %v2972_v35, %v2990_v52 }
 0x324   : > { %1013 = vmax.xlane.f32.xlu2 %v1012_v18 }
 0x329   : > { %v2998_v41 = vpop.f32.mrf.mxu0 }
 0x32a   : > { %v1015_v43 = vmax.f32 %v2982_v38, %v2998_v41 }
 0x32c   : > { %1016 = vmax.xlane.f32.xlu0 %v1015_v43  ;;  %1022 = vmax.xlane.f32.xlu2 %v1021_v5 }
 0x331   : > { %v3008_v9 = vpop.f32.mrf.mxu0 }
 0x332   : > { %v1018_v47 = vmax.f32 %v2988_v37, %v3008_v9 }
 0x334   : > { %1019 = vmax.xlane.f32.xlu1 %v1018_v47  ;;  %1025 = vmax.xlane.f32.xlu0 %v1024_v46 }
 0x33f   : > { %v981_v53 = vpop.xlane.xlu0 %980 }
 0x340   : > { %v1027_v11 = vsub.f32 %v2911_v19, %v981_v53  ;;  %v1028_v4 = vsub.f32 %v2928_v23, %v981_v53 }
 0x342   : > { %v1059_v20 = vmul.f32 1.442695, %v1027_v11  ;;  %v1061_v3 = vmul.f32 1.442695, %v1028_v4 }
 0x344   : > { %1827 = vpow2.f32 %v1059_v20 }
 0x345   : > { %1829 = vpow2.f32 %v1061_v3 }
 0x347   : > { %v984_v57 = vpop.xlane.xlu0 %983 }
 0x348   : > { %v1029_v56 = vsub.f32 %v2915_v14, %v984_v57  ;;  %v1030_v44 = vsub.f32 %v2934_v25, %v984_v57 }
 0x34a   : > { %v3018_v15 = vpop.eup %1827  ;;  %v1063_v42 = vmul.f32 1.442695, %v1029_v56  ;;  %v1065_v1 = vmul.f32 1.442695, %v1030_v44 }
 0x34b   : > { %v3020_v60 = vpop.eup %1829 }
 0x34c   : > { %1831 = vpow2.f32 %v1063_v42  ;;  %v1123_v29 = vadd.f32 %v3020_v60, %v3018_v15 }
 0x34d   : > { %1833 = vpow2.f32 %v1065_v1 }
 0x34e   : > { %1124 = vadd.xlane.f32.xlu1 %v1123_v29 }
 0x34f   : > { %v987_v10 = vpop.xlane.xlu1 %986 }
 0x350   : > { %v1031_v50 = vsub.f32 %v2922_v13, %v987_v10  ;;  %v1032_v59 = vsub.f32 %v2940_v36, %v987_v10 }
 0x352   : > { %v3026_v19 = vpop.eup %1831  ;;  %v1067_v14 = vmul.f32 1.442695, %v1031_v50  ;;  %v1069_v23 = vmul.f32 1.442695, %v1032_v59 }
 0x353   : > { %v3028_v26 = vpop.eup %1833  ;;  %v1187_v25 = vpack.c.bf16 %v3026_v19, %v3018_v15 }
 0x354   : > { %1835 = vpow2.f32 %v1067_v14  ;;  %v1188_v32 = vpack.c.bf16 %v3028_v26, %v3020_v60  ;;  %v1126_v58 = vadd.f32 %v3028_v26, %v3026_v19 }
 0x355   : > { %1837 = vpow2.f32 %v1069_v23  ;;  %1227 = vmatmul.bf16.vlgmr.msrb.gmra.mxu3 %v1187_v25 }
 0x356   : > { %1276 = vmatmul.bf16.vlgmr.msra.gmra.mxu0 %v1188_v32  ;;  %1127 = vadd.xlane.f32.xlu2 %v1126_v58 }
 0x357   : > { %v990_v13 = vpop.xlane.xlu1 %989 }
 0x358   : > { %v1033_v36 = vsub.f32 %v2924_v22, %v990_v13  ;;  %v1034_v17 = vsub.f32 %v2946_v0, %v990_v13 }
 0x35a   : > { %v3038_v27 = vpop.eup %1835  ;;  %v1071_v63 = vmul.f32 1.442695, %v1033_v36  ;;  %v1073_v55 = vmul.f32 1.442695, %v1034_v17 }
 0x35b   : > { %v3040_v30 = vpop.eup %1837 }
 0x35c   : > { %1839 = vpow2.f32 %v1071_v63  ;;  %v1129_v39 = vadd.f32 %v3040_v30, %v3038_v27 }
 0x35d   : > { %1841 = vpow2.f32 %v1073_v55 }
 0x35e   : > { %1130 = vadd.xlane.f32.xlu0 %v1129_v39 }
 0x35f   : > { %v993_v12 = vpop.xlane.xlu2 %992 }
 0x360   : > { %v1035_v48 = vsub.f32 %v2926_v6, %v993_v12  ;;  %v1036_v18 = vsub.f32 %v2950_v21, %v993_v12 }
 0x362   : > { %v3046_v22 = vpop.eup %1839  ;;  %v1075_v0 = vmul.f32 1.442695, %v1035_v48  ;;  %v1077_v43 = vmul.f32 1.442695, %v1036_v18 }
 0x363   : > { %v3048_v5 = vpop.eup %1841  ;;  %v1189_v46 = vpack.c.bf16 %v3046_v22, %v3038_v27 }
 0x364   : > { %1843 = vpow2.f32 %v1075_v0  ;;  %v1190_v47 = vpack.c.bf16 %v3048_v5, %v3040_v30  ;;  %v1132_v53 = vadd.f32 %v3048_v5, %v3046_v22 }
 0x365   : > { %1845 = vpow2.f32 %v1077_v43  ;;  %1232 = vmatmul.bf16.gmra.mxu3 %v1189_v46 }
 0x366   : > { %1281 = vmatmul.bf16.gmra.mxu0 %v1190_v47  ;;  %1133 = vadd.xlane.f32.xlu1 %v1132_v53 }
 0x367   : > { %v996_v6 = vpop.xlane.xlu2 %995 }
 0x368   : > { %v1037_v21 = vsub.f32 %v2932_v28, %v996_v6  ;;  %v1038_v11 = vsub.f32 %v2956_v7, %v996_v6 }
 0x36a   : > { %v3058_v4 = vpop.eup %1843  ;;  %v1079_v20 = vmul.f32 1.442695, %v1037_v21  ;;  %v1081_v3 = vmul.f32 1.442695, %v1038_v11 }
 0x36b   : > { %v3060_v57 = vpop.eup %1845 }
 0x36c   : > { %1847 = vpow2.f32 %v1079_v20  ;;  %v1135_v56 = vadd.f32 %v3060_v57, %v3058_v4 }
 0x36d   : > { %1849 = vpow2.f32 %v1081_v3 }
 0x36e   : > { %1136 = vadd.xlane.f32.xlu2 %v1135_v56 }
 0x36f   : > { %v999_v44 = vpop.xlane.xlu0 %998 }
 0x370   : > { %v1039_v42 = vsub.f32 %v2938_v33, %v999_v44  ;;  %v1040_v1 = vsub.f32 %v2962_v54, %v999_v44 }
 0x372   : > { %v3066_v28 = vpop.eup %1847  ;;  %v1083_v7 = vmul.f32 1.442695, %v1039_v42  ;;  %v1085_v29 = vmul.f32 1.442695, %v1040_v1 }
 0x373   : > { %v3068_v10 = vpop.eup %1849  ;;  %v1191_v50 = vpack.c.bf16 %v3066_v28, %v3058_v4 }
 0x374   : > { %1851 = vpow2.f32 %v1083_v7  ;;  %v1192_v59 = vpack.c.bf16 %v3068_v10, %v3060_v57  ;;  %v1138_v14 = vadd.f32 %v3068_v10, %v3066_v28 }
 0x375   : > { %1853 = vpow2.f32 %v1085_v29  ;;  %1237 = vmatmul.bf16.gmra.mxu3 %v1191_v50 }
 0x376   : > { %1286 = vmatmul.bf16.gmra.mxu0 %v1192_v59  ;;  %1139 = vadd.xlane.f32.xlu0 %v1138_v14 }
 0x377   : > { %v1002_v33 = vpop.xlane.xlu1 %1001 }
 0x378   : > { %v1041_v54 = vsub.f32 %v2944_v24, %v1002_v33  ;;  %v1042_v23 = vsub.f32 %v2968_v62, %v1002_v33 }
 0x37a   : > { %v3078_v25 = vpop.eup %1851  ;;  %v1087_v32 = vmul.f32 1.442695, %v1041_v54  ;;  %v1089_v58 = vmul.f32 1.442695, %v1042_v23 }
 0x37b   : > { %v3080_v13 = vpop.eup %1853 }
 0x37c   : > { %1855 = vpow2.f32 %v1087_v32  ;;  %v1141_v36 = vadd.f32 %v3080_v13, %v3078_v25 }
 0x37d   : > { %1857 = vpow2.f32 %v1089_v58 }
 0x37e   : > { %1142 = vadd.xlane.f32.xlu1 %v1141_v36 }
 0x37f   : > { %v1005_v17 = vpop.xlane.xlu2 %1004 }
 0x380   : > { %v1043_v63 = vsub.f32 %v2954_v8, %v1005_v17  ;;  %v1044_v55 = vsub.f32 %v2974_v34, %v1005_v17 }
 0x382   : > { %v3086_v24 = vpop.eup %1855  ;;  %v1091_v62 = vmul.f32 1.442695, %v1043_v63  ;;  %v1093_v39 = vmul.f32 1.442695, %v1044_v55 }
 0x383   : > { %v3088_v12 = vpop.eup %1857  ;;  %v1193_v48 = vpack.c.bf16 %v3086_v24, %v3078_v25 }
 0x384   : > { %1859 = vpow2.f32 %v1091_v62  ;;  %v1194_v18 = vpack.c.bf16 %v3088_v12, %v3080_v13  ;;  %v1144_v0 = vadd.f32 %v3088_v12, %v3086_v24 }
 0x385   : > { %1861 = vpow2.f32 %v1093_v39  ;;  %1242 = vmatmul.bf16.gmra.mxu3 %v1193_v48 }
 0x386   : > { %1291 = vmatmul.bf16.gmra.mxu0 %v1194_v18  ;;  %1145 = vadd.xlane.f32.xlu2 %v1144_v0 }
 0x387   : > { %v1008_v8 = vpop.xlane.xlu0 %1007 }
 0x388   : > { %v1045_v34 = vsub.f32 %v2960_v16, %v1008_v8  ;;  %v1046_v43 = vsub.f32 %v2978_v61, %v1008_v8 }
 0x38a   : > { %v3098_v46 = vpop.eup %1859  ;;  %v1095_v47 = vmul.f32 1.442695, %v1045_v34  ;;  %v1097_v53 = vmul.f32 1.442695, %v1046_v43 }
 0x38b   : > { %v3100_v6 = vpop.eup %1861 }
 0x38c   : > { %1863 = vpow2.f32 %v1095_v47  ;;  %v1147_v21 = vadd.f32 %v3100_v6, %v3098_v46 }
 0x38d   : > { %1865 = vpow2.f32 %v1097_v53 }
 0x38e   : > { %1148 = vadd.xlane.f32.xlu0 %v1147_v21 }
 0x38f   : > { %v1011_v11 = vpop.xlane.xlu1 %1010 }
 0x390   : > { %v1047_v20 = vsub.f32 %v2966_v2, %v1011_v11  ;;  %v1048_v3 = vsub.f32 %v2984_v45, %v1011_v11 }
 0x392   : > { %v3106_v16 = vpop.eup %1863  ;;  %v1099_v61 = vmul.f32 1.442695, %v1047_v20  ;;  %v1101_v56 = vmul.f32 1.442695, %v1048_v3 }
 0x393   : > { %v3108_v44 = vpop.eup %1865  ;;  %v1195_v42 = vpack.c.bf16 %v3106_v16, %v3098_v46 }
 0x394   : > { %1867 = vpow2.f32 %v1099_v61  ;;  %v1196_v1 = vpack.c.bf16 %v3108_v44, %v3100_v6  ;;  %v1150_v7 = vadd.f32 %v3108_v44, %v3106_v16 }
 0x395   : > { %1869 = vpow2.f32 %v1101_v56  ;;  %1247 = vmatmul.bf16.gmra.mxu3 %v1195_v42 }
 0x396   : > { %1296 = vmatmul.bf16.gmra.mxu0 %v1196_v1  ;;  %1151 = vadd.xlane.f32.xlu1 %v1150_v7 }
 0x397   : > { %v1014_v2 = vpop.xlane.xlu2 %1013 }
 0x398   : > { %v1049_v45 = vsub.f32 %v2972_v35, %v1014_v2  ;;  %v1050_v29 = vsub.f32 %v2990_v52, %v1014_v2 }
 0x39a   : > { %v3118_v50 = vpop.eup %1867  ;;  %v1103_v59 = vmul.f32 1.442695, %v1049_v45  ;;  %v1105_v14 = vmul.f32 1.442695, %v1050_v29 }
 0x39b   : > { %v3120_v33 = vpop.eup %1869 }
 0x39c   : > { %1871 = vpow2.f32 %v1103_v59  ;;  %v1153_v54 = vadd.f32 %v3120_v33, %v3118_v50 }
 0x39d   : > { %1873 = vpow2.f32 %v1105_v14 }
 0x39e   : > { %1154 = vadd.xlane.f32.xlu2 %v1153_v54 }
 0x39f   : > { %v1017_v23 = vpop.xlane.xlu0 %1016  ;;  %v1023_v32 = vpop.xlane.xlu2 %1022 }
 0x3a0   : > { %v1051_v58 = vsub.f32 %v2982_v38, %v1017_v23  ;;  %v1052_v35 = vsub.f32 %v2998_v41, %v1017_v23  ;;  %v1055_v52 = vsub.f32 %v2996_v40, %v1023_v32  ;;  %v1056_v36 = vsub.f32 %v2994_v31, %v1023_v32 }
 0x3a2   : > { %v3128_v17 = vpop.eup %1871  ;;  %v1107_v63 = vmul.f32 1.442695, %v1051_v58  ;;  %v1109_v55 = vmul.f32 1.442695, %v1052_v35  ;;  %v1115_v62 = vmul.f32 1.442695, %v1055_v52 }
 0x3a3   : > { %v3130_v39 = vpop.eup %1873  ;;  %v1117_v48 = vmul.f32 1.442695, %v1056_v36  ;;  %v1197_v18 = vpack.c.bf16 %v3128_v17, %v3118_v50 }
 0x3a4   : > { %1875 = vpow2.f32 %v1107_v63  ;;  %v1198_v38 = vpack.c.bf16 %v3130_v39, %v3120_v33  ;;  %v1156_v40 = vadd.f32 %v3130_v39, %v3128_v17 }
 0x3a5   : > { %1877 = vpow2.f32 %v1109_v55  ;;  %1252 = vmatmul.bf16.gmra.mxu3 %v1197_v18  ;;  %v3185_v55 = vstv %s1317_s13 }
 0x3a6   : > { %1879 = vpow2.f32 %v1115_v62  ;;  %1301 = vmatmul.bf16.gmra.mxu0 %v1198_v38  ;;  %1157 = vadd.xlane.f32.xlu0 %v1156_v40 }
 0x3a7   : > { %1881 = vpow2.f32 %v1117_v48  ;;  %v1020_v31 = vpop.xlane.xlu1 %1019  ;;  %v1026_v41 = vpop.xlane.xlu0 %1025 }
 0x3a8   : > { %v1053_v0 = vsub.f32 %v2988_v37, %v1020_v31  ;;  %v1054_v8 = vsub.f32 %v3008_v9, %v1020_v31  ;;  %v1057_v34 = vsub.f32 %v3006_v49, %v1026_v41  ;;  %v1058_v43 = vsub.f32 %v3004_v51, %v1026_v41 }
 0x3aa   : > { %v3142_v47 = vpop.eup %1875  ;;  %v1111_v53 = vmul.f32 1.442695, %v1053_v0  ;;  %v1113_v21 = vmul.f32 1.442695, %v1054_v8  ;;  %v1119_v11 = vmul.f32 1.442695, %v1057_v34 }
 0x3ab   : > { %v3144_v20 = vpop.eup %1877  ;;  %v1121_v3 = vmul.f32 1.442695, %v1058_v43  ;;  %v1923_v0 = vld [vmem:[%s2369_s22] sm:$0xff] }
 0x3ac   : > { %v3146_v61 = vpop.eup %1879  ;;  %1883 = vpow2.f32 %v1111_v53  ;;  %v1159_v37 = vadd.f32 %v3144_v20, %v3142_v47 }
 0x3ad   : > { %v3150_v56 = vpop.eup %1881  ;;  %1885 = vpow2.f32 %v1113_v21 }
 0x3ae   : > { %1887 = vpow2.f32 %v1119_v11  ;;  %1160 = vadd.xlane.f32.xlu1 %v1159_v37  ;;  %v1165_v51 = vadd.f32 %v3150_v56, %v3146_v61 }
 0x3af   : > { %1889 = vpow2.f32 %v1121_v3 }
 0x3b0   : > { %1166 = vadd.xlane.f32.xlu0 %v1165_v51  ;;  %v1924_v51 = vld [vmem:[%s2369_s22 + $0x8] sm:$0xff] }
 0x3b2   : > { %v3154_v49 = vpop.eup %1883 }
 0x3b3   : > { %v3156_v9 = vpop.eup %1885  ;;  %v1199_v42 = vpack.c.bf16 %v3154_v49, %v3142_v47 }
 0x3b4   : > { %v3160_v1 = vpop.eup %1887  ;;  %v1200_v7 = vpack.c.bf16 %v3156_v9, %v3144_v20  ;;  %v1162_v2 = vadd.f32 %v3156_v9, %v3154_v49 }
 0x3b5   : > { %v3166_v45 = vpop.eup %1889  ;;  %1257 = vmatmul.bf16.gmra.mxu3 %v1199_v42  ;;  %v1201_v14 = vpack.c.bf16 %v3160_v1, %v3146_v61 }
 0x3b6   : > { %1306 = vmatmul.bf16.gmra.mxu0 %v1200_v7  ;;  %1163 = vadd.xlane.f32.xlu2 %v1162_v2  ;;  %v1168_v29 = vadd.f32 %v3166_v45, %v3160_v1  ;;  %v1202_v54 = vpack.c.bf16 %v3166_v45, %v3150_v56 }
 0x3b8   : > { %1169 = vadd.xlane.f32.xlu1 %v1168_v29 }
 0x3c1   : > { %v1125_v59 = vpop.xlane.xlu1 %1124 }
 0x3c2   : > { %1891 = vrcp.f32 %v1125_v59 }
 0x3c5   : > { %1262 = vmatmul.bf16.gmra.mxu3 %v1201_v14 }
 0x3c6   : > { %1311 = vmatmul.bf16.gmra.mxu0 %v1202_v54 }
 0x3c8   : > { %v1892_v23 = vpop.eup %1891 }
 0x3c9   : > { %v1383_v32 = vmul.f32 %v1892_v23, %v3018_v15  ;;  %v1384_v58 = vmul.f32 %v1892_v23, %v3020_v60  ;;  %v1128_v35 = vpop.xlane.xlu2 %1127 }
 0x3ca   : > { %1893 = vrcp.f32 %v1128_v35 }
 0x3cb   : > { %1415 = vst [vmem:[%s3177_s25] sm:$0xff] %v1383_v32  ;;  %v1925_v32 = vld [vmem:[%s2369_s22 + $0x10] sm:$0xff] }
 0x3cc   : > { %1416 = vst [vmem:[%s3177_s25 + $0x8] sm:$0xff] %v1384_v58 }
 0x3d0   : > { %v1894_v52 = vpop.eup %1893 }
 0x3d1   : > { %v1385_v36 = vmul.f32 %v1894_v52, %v3026_v19  ;;  %v1386_v63 = vmul.f32 %v1894_v52, %v3028_v26  ;;  %v1131_v15 = vpop.xlane.xlu0 %1130  ;;  %v1319_v26 = vmul.f32 %v1892_v23, %v3185_v55  ;;  %v1320_v11 = vmul.f32 %v1894_v52, %v3185_v55 }
 0x3d2   : > { %1895 = vrcp.f32 %v1131_v15 }
 0x3d3   : > { %1417 = vst [vmem:[%s3177_s25 + $0x10] sm:$0xff] %v1385_v36  ;;  %v1277_v60 = vpop.f32.mrf.mxu0 }
 0x3d4   : > { %1418 = vst [vmem:[%s3177_s25 + $0x18] sm:$0xff] %v1386_v63 }
 0x3d8   : > { %v1896_v62 = vpop.eup %1895  ;;  %v1228_v48 = vpop.f32.mrf.mxu3 }
 0x3d9   : > { %v1387_v18 = vmul.f32 %v1896_v62, %v3038_v27  ;;  %v1388_v38 = vmul.f32 %v1896_v62, %v3040_v30  ;;  %v1134_v19 = vpop.xlane.xlu1 %1133  ;;  %v1278_v40 = vadd.f32 %v1277_v60, %v1228_v48  ;;  %v1321_v59 = vmul.f32 %v1896_v62, %v3185_v55  ;;  %v1926_v48 = vld [vmem:[%s2369_s22 + $0x18] sm:$0xff] }
 0x3da   : > { %1897 = vrcp.f32 %v1134_v19 }
 0x3db   : > { %1419 = vst [vmem:[%s3177_s25 + $0x20] sm:$0xff] %v1387_v18  ;;  %v1335_v31 = vmul.f32 %v1319_v26, %v1278_v40  ;;  %v1279_v41 = vpop.f32.mrf.mxu0 }
 0x3dc   : > { %1420 = vst [vmem:[%s3177_s25 + $0x28] sm:$0xff] %v1388_v38 }
 0x3dd   : > { %v1351_v8 = vadd.f32 %v1923_v0, %v1335_v31 }
 0x3df   : > { %1367 = vst [vmem:[%s3195_s29] sm:$0xff] %v1351_v8  ;;  %v1927_v8 = vld [vmem:[%s2369_s22 + $0x20] sm:$0xff] }
 0x3e0   : > { %v1898_v27 = vpop.eup %1897  ;;  %v1230_v30 = vpop.f32.mrf.mxu3 }
 0x3e1   : > { %v1389_v34 = vmul.f32 %v1898_v27, %v3046_v22  ;;  %v1390_v43 = vmul.f32 %v1898_v27, %v3048_v5  ;;  %v1137_v53 = vpop.xlane.xlu2 %1136  ;;  %v1280_v21 = vadd.f32 %v1279_v41, %v1230_v30  ;;  %v1322_v15 = vmul.f32 %v1898_v27, %v3185_v55 }
 0x3e2   : > { %1899 = vrcp.f32 %v1137_v53 }
 0x3e3   : > { %1421 = vst [vmem:[%s3177_s25 + $0x30] sm:$0xff] %v1389_v34  ;;  %v1336_v3 = vmul.f32 %v1320_v11, %v1280_v21  ;;  %v1282_v37 = vpop.f32.mrf.mxu0 }
 0x3e4   : > { %1422 = vst [vmem:[%s3177_s25 + $0x38] sm:$0xff] %v1390_v43 }
 0x3e5   : > { %v1352_v42 = vadd.f32 %v1924_v51, %v1336_v3 }
 0x3e7   : > { %1368 = vst [vmem:[%s3195_s29 + $0x8] sm:$0xff] %v1352_v42 }
 0x3e8   : > { %v1900_v7 = vpop.eup %1899  ;;  %v1233_v22 = vpop.f32.mrf.mxu3 }
 0x3e9   : > { %v1391_v5 = vmul.f32 %v1900_v7, %v3058_v4  ;;  %v1392_v2 = vmul.f32 %v1900_v7, %v3060_v57  ;;  %v1283_v29 = vadd.f32 %v1282_v37, %v1233_v22  ;;  %v1140_v14 = vpop.xlane.xlu0 %1139  ;;  %v1323_v31 = vmul.f32 %v1900_v7, %v3185_v55  ;;  %v1928_v37 = vld [vmem:[%s2369_s22 + $0x28] sm:$0xff] }
 0x3ea   : > { %1901 = vrcp.f32 %v1140_v14  ;;  %v1929_v14 = vld [vmem:[%s2369_s22 + $0x30] sm:$0xff] }
 0x3eb   : > { %1423 = vst [vmem:[%s3177_s25 + $0x40] sm:$0xff] %v1391_v5  ;;  %v1337_v54 = vmul.f32 %v1321_v59, %v1283_v29  ;;  %v1284_v23 = vpop.f32.mrf.mxu0 }
 0x3ec   : > { %1424 = vst [vmem:[%s3177_s25 + $0x48] sm:$0xff] %v1392_v2 }
 0x3ed   : > { %v1353_v58 = vadd.f32 %v1925_v32, %v1337_v54 }
 0x3ef   : > { %1369 = vst [vmem:[%s3195_s29 + $0x10] sm:$0xff] %v1353_v58 }
 0x3f0   : > { %v1902_v35 = vpop.eup %1901  ;;  %v1235_v4 = vpop.f32.mrf.mxu3 }
 0x3f1   : > { %v1393_v57 = vmul.f32 %v1902_v35, %v3066_v28  ;;  %v1394_v52 = vmul.f32 %v1902_v35, %v3068_v10  ;;  %v1143_v36 = vpop.xlane.xlu1 %1142  ;;  %v1285_v63 = vadd.f32 %v1284_v23, %v1235_v4  ;;  %v1324_v53 = vmul.f32 %v1902_v35, %v3185_v55 }
 0x3f2   : > { %1903 = vrcp.f32 %v1143_v36  ;;  %v1930_v36 = vld [vmem:[%s2369_s22 + $0x38] sm:$0xff] }
 0x3f3   : > { %1425 = vst [vmem:[%s3177_s25 + $0x50] sm:$0xff] %v1393_v57  ;;  %v1338_v60 = vmul.f32 %v1322_v15, %v1285_v63  ;;  %v1287_v62 = vpop.f32.mrf.mxu0 }
 0x3f4   : > { %1426 = vst [vmem:[%s3177_s25 + $0x58] sm:$0xff] %v1394_v52 }
 0x3f5   : > { %v1354_v18 = vadd.f32 %v1926_v48, %v1338_v60 }
 0x3f7   : > { %1370 = vst [vmem:[%s3195_s29 + $0x18] sm:$0xff] %v1354_v18 }
 0x3f8   : > { %v1904_v38 = vpop.eup %1903  ;;  %v1238_v28 = vpop.f32.mrf.mxu3 }
 0x3f9   : > { %v1395_v10 = vmul.f32 %v1904_v38, %v3078_v25  ;;  %v1396_v19 = vmul.f32 %v1904_v38, %v3080_v13  ;;  %v1146_v40 = vpop.xlane.xlu2 %1145  ;;  %v1288_v26 = vadd.f32 %v1287_v62, %v1238_v28  ;;  %v1325_v2 = vmul.f32 %v1904_v38, %v3185_v55 }
 0x3fa   : > { %1905 = vrcp.f32 %v1146_v40 }
 0x3fb   : > { %1427 = vst [vmem:[%s3177_s25 + $0x60] sm:$0xff] %v1395_v10  ;;  %v1339_v41 = vmul.f32 %v1323_v31, %v1288_v26  ;;  %v1289_v0 = vpop.f32.mrf.mxu0  ;;  %v1931_v10 = vld [vmem:[%s2369_s22 + $0x40] sm:$0xff] }
 0x3fc   : > { %1428 = vst [vmem:[%s3177_s25 + $0x68] sm:$0xff] %v1396_v19 }
 0x3fd   : > { %v1355_v27 = vadd.f32 %v1927_v8, %v1339_v41 }
 0x3ff   : > { %1371 = vst [vmem:[%s3195_s29 + $0x20] sm:$0xff] %v1355_v27 }
 0x400   : > { %v1906_v30 = vpop.eup %1905  ;;  %v1240_v25 = vpop.f32.mrf.mxu3 }
 0x401   : > { %v1397_v13 = vmul.f32 %v1906_v30, %v3086_v24  ;;  %v1398_v34 = vmul.f32 %v1906_v30, %v3088_v12  ;;  %v1290_v43 = vadd.f32 %v1289_v0, %v1240_v25  ;;  %v1149_v21 = vpop.xlane.xlu0 %1148  ;;  %v1326_v4 = vmul.f32 %v1906_v30, %v3185_v55  ;;  %v1932_v25 = vld [vmem:[%s2369_s22 + $0x48] sm:$0xff] }
 0x402   : > { %1907 = vrcp.f32 %v1149_v21 }
 0x403   : > { %1429 = vst [vmem:[%s3177_s25 + $0x70] sm:$0xff] %v1397_v13  ;;  %v1340_v11 = vmul.f32 %v1324_v53, %v1290_v43  ;;  %v1292_v3 = vpop.f32.mrf.mxu0 }
 0x404   : > { %1430 = vst [vmem:[%s3177_s25 + $0x78] sm:$0xff] %v1398_v34 }
 0x405   : > { %v1356_v51 = vadd.f32 %v1928_v37, %v1340_v11 }
 0x407   : > { %1372 = vst [vmem:[%s3195_s29 + $0x28] sm:$0xff] %v1356_v51 }
 0x408   : > { %v1908_v42 = vpop.eup %1907  ;;  %v1243_v24 = vpop.f32.mrf.mxu3 }
 0x409   : > { %v1399_v12 = vmul.f32 %v1908_v42, %v3098_v46  ;;  %v1400_v7 = vmul.f32 %v1908_v42, %v3100_v6  ;;  %v1152_v22 = vpop.xlane.xlu1 %1151  ;;  %v1293_v5 = vadd.f32 %v1292_v3, %v1243_v24  ;;  %v1327_v48 = vmul.f32 %v1908_v42, %v3185_v55  ;;  %v1933_v24 = vld [vmem:[%s2369_s22 + $0x50] sm:$0xff] }
 0x40a   : > { %1909 = vrcp.f32 %v1152_v22 }
 0x40b   : > { %1431 = vst [vmem:[%s3177_s25 + $0x80] sm:$0xff] %v1399_v12  ;;  %v1341_v29 = vmul.f32 %v1325_v2, %v1293_v5  ;;  %v1294_v59 = vpop.f32.mrf.mxu0 }
 0x40c   : > { %1432 = vst [vmem:[%s3177_s25 + $0x88] sm:$0xff] %v1400_v7 }
 0x40d   : > { %v1357_v54 = vadd.f32 %v1929_v14, %v1341_v29 }
 0x40f   : > { %1373 = vst [vmem:[%s3195_s29 + $0x30] sm:$0xff] %v1357_v54 }
 0x410   : > { %v1910_v23 = vpop.eup %1909  ;;  %v1245_v46 = vpop.f32.mrf.mxu3 }
 0x411   : > { %v1401_v6 = vmul.f32 %v1910_v23, %v3106_v16  ;;  %v1402_v32 = vmul.f32 %v1910_v23, %v3108_v44  ;;  %v1155_v58 = vpop.xlane.xlu2 %1154  ;;  %v1295_v35 = vadd.f32 %v1294_v59, %v1245_v46  ;;  %v1328_v0 = vmul.f32 %v1910_v23, %v3185_v55 }
 0x412   : > { %1911 = vrcp.f32 %v1155_v58 }
 0x413   : > { %1433 = vst [vmem:[%s3177_s25 + $0x90] sm:$0xff] %v1401_v6  ;;  %v1342_v57 = vmul.f32 %v1326_v4, %v1295_v35  ;;  %v1297_v52 = vpop.f32.mrf.mxu0 }
 0x414   : > { %1434 = vst [vmem:[%s3177_s25 + $0x98] sm:$0xff] %v1402_v32 }
 0x415   : > { %v1358_v63 = vadd.f32 %v1930_v36, %v1342_v57 }
 0x417   : > { %1374 = vst [vmem:[%s3195_s29 + $0x38] sm:$0xff] %v1358_v63 }
 0x418   : > { %v1912_v15 = vpop.eup %1911  ;;  %v1248_v16 = vpop.f32.mrf.mxu3 }
 0x419   : > { %v1403_v44 = vmul.f32 %v1912_v15, %v3118_v50  ;;  %v1404_v60 = vmul.f32 %v1912_v15, %v3120_v33  ;;  %v1298_v62 = vadd.f32 %v1297_v52, %v1248_v16  ;;  %v1158_v18 = vpop.xlane.xlu0 %1157  ;;  %v1329_v11 = vmul.f32 %v1912_v15, %v3185_v55 }
 0x41a   : > { %1913 = vrcp.f32 %v1158_v18 }
 0x41b   : > { %1435 = vst [vmem:[%s3177_s25 + $0xa0] sm:$0xff] %v1403_v44  ;;  %v1343_v38 = vmul.f32 %v1327_v48, %v1298_v62  ;;  %v1299_v28 = vpop.f32.mrf.mxu0 }
 0x41c   : > { %1436 = vst [vmem:[%s3177_s25 + $0xa8] sm:$0xff] %v1404_v60 }
 0x41d   : > { %v1359_v19 = vadd.f32 %v1931_v10, %v1343_v38 }
 0x41f   : > { %1375 = vst [vmem:[%s3195_s29 + $0x40] sm:$0xff] %v1359_v19 }
 0x420   : > { %v1914_v40 = vpop.eup %1913  ;;  %v1250_v50 = vpop.f32.mrf.mxu3 }
 0x421   : > { %v1405_v33 = vmul.f32 %v1914_v40, %v3128_v17  ;;  %v1406_v26 = vmul.f32 %v1914_v40, %v3130_v39  ;;  %v1161_v31 = vpop.xlane.xlu1 %1160  ;;  %v1300_v41 = vadd.f32 %v1299_v28, %v1250_v50  ;;  %v1330_v2 = vmul.f32 %v1914_v40, %v3185_v55 }
 0x422   : > { %1915 = vrcp.f32 %v1161_v31 }
 0x423   : > { %1437 = vst [vmem:[%s3177_s25 + $0xb0] sm:$0xff] %v1405_v33  ;;  %v1344_v8 = vmul.f32 %v1328_v0, %v1300_v41  ;;  %v1167_v27 = vpop.xlane.xlu0 %1166  ;;  %v1302_v30 = vpop.f32.mrf.mxu0 }
 0x424   : > { %1438 = vst [vmem:[%s3177_s25 + $0xb8] sm:$0xff] %v1406_v26  ;;  %1917 = vrcp.f32 %v1167_v27 }
 0x425   : > { %v1360_v13 = vadd.f32 %v1932_v25, %v1344_v8 }
 0x427   : > { %1376 = vst [vmem:[%s3195_s29 + $0x48] sm:$0xff] %v1360_v13 }
 0x428   : > { %v3263_v17 = vpop.eup %1915  ;;  %v1253_v39 = vpop.f32.mrf.mxu3 }
 0x429   : > { %v1407_v34 = vmul.f32 %v3263_v17, %v3142_v47  ;;  %v1408_v43 = vmul.f32 %v3263_v17, %v3144_v20  ;;  %v1164_v53 = vpop.xlane.xlu2 %1163  ;;  %v1303_v21 = vadd.f32 %v1302_v30, %v1253_v39 }
 0x42a   : > { %v3270_v3 = vpop.eup %1917  ;;  %1919 = vrcp.f32 %v1164_v53 }
 0x42b   : > { %1439 = vst [vmem:[%s3177_s25 + $0xc0] sm:$0xff] %v1407_v34  ;;  %v1411_v37 = vmul.f32 %v3270_v3, %v3146_v61  ;;  %v1412_v47 = vmul.f32 %v3270_v3, %v3150_v56  ;;  %v1345_v20 = vmul.f32 %v1329_v11, %v1303_v21  ;;  %v1170_v51 = vpop.xlane.xlu1 %1169  ;;  %v1304_v42 = vpop.f32.mrf.mxu0 }
 0x42c   : > { %1440 = vst [vmem:[%s3177_s25 + $0xc8] sm:$0xff] %v1408_v43  ;;  %1921 = vrcp.f32 %v1170_v51 }
 0x42d   : > { %1443 = vst [vmem:[%s3177_s25 + $0xe0] sm:$0xff] %v1411_v37  ;;  %v1361_v12 = vadd.f32 %v1933_v24, %v1345_v20 }
 0x42e   : > { %1444 = vst [vmem:[%s3177_s25 + $0xe8] sm:$0xff] %v1412_v47 }
 0x42f   : > { %1377 = vst [vmem:[%s3195_s29 + $0x50] sm:$0xff] %v1361_v12 }
 0x430   : > { %v1920_v61 = vpop.eup %1919  ;;  %v1255_v56 = vpop.f32.mrf.mxu3 }
 0x431   : > { %v1409_v7 = vmul.f32 %v1920_v61, %v3154_v49  ;;  %v1410_v22 = vmul.f32 %v1920_v61, %v3156_v9  ;;  %v1305_v5 = vadd.f32 %v1304_v42, %v1255_v56  ;;  %v1934_v49 = vld [vmem:[%s2369_s22 + $0x58] sm:$0xff] }
 0x432   : > { %v1922_v29 = vpop.eup %1921 }
 0x433   : > { %1441 = vst [vmem:[%s3177_s25 + $0xd0] sm:$0xff] %v1409_v7  ;;  %v1413_v59 = vmul.f32 %v1922_v29, %v3160_v1  ;;  %v1414_v14 = vmul.f32 %v1922_v29, %v3166_v45  ;;  %v1346_v54 = vmul.f32 %v1330_v2, %v1305_v5  ;;  %v1307_v23 = vpop.f32.mrf.mxu0 }
 0x434   : > { %1442 = vst [vmem:[%s3177_s25 + $0xd8] sm:$0xff] %v1410_v22 }
 0x435   : > { %1445 = vst [vmem:[%s3177_s25 + $0xf0] sm:$0xff] %v1413_v59  ;;  %v1362_v9 = vadd.f32 %v1934_v49, %v1346_v54 }
 0x436   : > { %1446 = vst [vmem:[%s3177_s25 + $0xf8] sm:$0xff] %v1414_v14 }
 0x437   : > { %1378 = vst [vmem:[%s3195_s29 + $0x58] sm:$0xff] %v1362_v9 }
 0x438   : > { %v1258_v46 = vpop.f32.mrf.mxu3 }
 0x439   : > { %2026 = shalt.err (!%p2023_p7)
}
 0x43a   : > { %s2161_s25 = smov 256   ;;  %s2162_s2 = smov 16   ;;  %v1308_v1 = vadd.f32 %v1307_v23, %v1258_v46  ;;  %v1331_v45 = vmul.f32 %v3263_v17, %v3185_v55  ;;  %v1935_v58 = vld [vmem:[%s2369_s22 + $0x60] sm:$0xff]  ;;  %v1332_v52 = vmul.f32 %v1920_v61, %v3185_v55  ;;  %v1936_v63 = vld [vmem:[%s2369_s22 + $0x68] sm:$0xff]  ;;  %v1333_v62 = vmul.f32 %v3270_v3, %v3185_v55  ;;  %v1937_v18 = vld [vmem:[%s2369_s22 + $0x70] sm:$0xff] }
 0x43b   : > { %1713 = dma.vmem_to_hbm [thread:$0]  (%p2301_p9), %s1488_s27, 4096, %s1490_s18, %s1453_s21, %s2161_s25, %s2161_s25, %s2162_s2   ;;  %v1309_v32 = vpop.f32.mrf.mxu0  ;;  %v1334_v40 = vmul.f32 %v1922_v29, %v3185_v55 }
 0x43c   : > { %v1347_v6 = vmul.f32 %v1331_v45, %v1308_v1  ;;  %s1673_s1 = sshll.u32 %s2141_s6, 4  ;;  %s1674_s2 = sshll.u32 %s3417_s28, 5  ;;  %v1938_v33 = vld [vmem:[%s2369_s22 + $0x78] sm:$0xff] }
 0x43d   : > { %s1464_s27 = sadd.s32 %s1674_s2, %s1673_s1  ;;  %s3420_s6 = sld [smem:[#allocation24_spill]] }
 0x43e   : > { %v1363_v35 = vadd.f32 %v1935_v58, %v1347_v6  ;;  %s1675_s18 = sshll.u32 %s1464_s27, 3  ;;  %s1467_s26 = sshll.u32 %s3195_s29, 4  ;;  %s1468_s26 = int_to_ptr.vmem [resolvable:$true] %s1467_s26 }
 0x43f   : > { %s1448_s17 = scalar_lea.sflag [#allocation5], %s2363_s24 }
 0x440   : > { %1379 = vst [vmem:[%s3195_s29 + $0x60] sm:$0xff] %v1363_v35  ;;  %v1260_v4 = vpop.f32.mrf.mxu3 }
 0x441   : > { %v1310_v57 = vadd.f32 %v1309_v32, %v1260_v4 }
 0x443   : > { %v1348_v36 = vmul.f32 %v1332_v52, %v1310_v57  ;;  %v1312_v16 = vpop.f32.mrf.mxu0  ;;  %s3421_s0 = smov %s3420_s6  ;;  %s1466_s28 = scalar_lea.hbm %s3420_s6, %s1675_s18 }
 0x444   : > { %s1469_s8 = sshll.u32 %s1466_s28, 4  ;;  %s2047_s27 = scalar_lea.hbm %s3421_s0, 512  ;;  %s1470_s8 = int_to_ptr.hbm [resolvable:$true] %s1469_s8 }
 0x445   : > { %v1364_v15 = vadd.f32 %v1936_v63, %v1348_v36  ;;  %s2041_s20 = sshra.s32 %s1470_s8, 4  ;;  %s2042_s20 = int_to_ptr.hbm [resolvable:$true] %s2041_s20 }
 0x446   : > { %s2043_s25 = scalar_lea.hbm %s2042_s20, 128  ;;  %p2048_p11 = scmp.lt.s32.totalorder %s2042_s20, %s3421_s0 }
 0x447   : > { %1380 = vst [vmem:[%s3195_s29 + $0x68] sm:$0xff] %v1364_v15  ;;  %p2044_p10 = scmp.ne.s32.totalorder %s2042_s20, %s2043_s25  ;;  %p2049_p2 = scmp.lt.s32.totalorder %s2047_s27, %s2043_s25 }
 0x448   : > { %v1263_v44 = vpop.f32.mrf.mxu3 }
 0x449   : > { %v1313_v60 = vadd.f32 %v1312_v16, %v1263_v44  ;;  %p2045_p3 = pnand %p2044_p10, %p2301_p9  ;;  %p2050_p6 = por %p2049_p2, %p2048_p11 }
 0x44b   : > { %v1349_v48 = vmul.f32 %v1333_v62, %v1313_v60  ;;  %v1314_v28 = vpop.f32.mrf.mxu0  ;;  %p2046_p12 = pneg %p2045_p3 }
 0x44d   : > { %v1365_v38 = vadd.f32 %v1937_v18, %v1349_v48  ;;  %p2051_p8 = pnand %p2050_p6, %p2046_p12 }
 0x44f   : > { %1381 = vst [vmem:[%s3195_s29 + $0x70] sm:$0xff] %v1365_v38 }
 0x450   : > { %v1265_v10 = vpop.f32.mrf.mxu3 }
 0x451   : > { %v1315_v19 = vadd.f32 %v1314_v28, %v1265_v10 }
 0x453   : > { %v1350_v50 = vmul.f32 %v1334_v40, %v1315_v19 }
 0x455   : > { %v1366_v26 = vadd.f32 %v1938_v33, %v1350_v50 }
 0x457   : > { %1382 = vst [vmem:[%s3195_s29 + $0x78] sm:$0xff] %v1366_v26 }
 0x458   : > { %2054 = shalt.err (!%p2051_p8)
}
 0x459   : > { %s2163_s24 = smov 128   ;;  %s2164_s22 = smov 8  }
 0x45a   : > { %1712 = dma.vmem_to_hbm [thread:$0]  (%p2301_p9), %s1468_s26, 2048, %s1470_s8, %s1448_s17, %s2163_s24, %s2163_s24, %s2164_s22  }
 0x45b PF: > { %s3422_s29 = sld [smem:[#allocation15_spill]]  ;;  %p1731_p0 = scmp.ge.s32.totalorder %s2157_s16, 2 }
 0x45d   : > { %p1724_p1 = pnand %p1731_p0, %p2311_p13 }
 0x45f   : > { %p1725_p4 = pneg %p1724_p1 }
 0x461   : > { %s1504_s6 = sand.u32 1, %s3422_s29  }
 0x462   : > { %s1505_s28 = scalar_lea.sflag [#allocation5], %s1504_s6 }
 0x463   : > { %2108 = dma.done.wait (%p1725_p4), %s1505_s28, 2048  }
 0x464   : > { %2110 = vsyncadd (%p1725_p4), %s1505_s28, 4294965248  ;;  %s1515_s20 = scalar_lea.sflag [#allocation10], %s1504_s6 }
 0x465   : > { %2112 = dma.done.wait (%p1725_p4), %s1515_s20, 4096  }
 0x466   : > { %2114 = vsyncadd (%p1725_p4), %s1515_s20, 4294963200  ;;  %s32_s16 = sadd.s32 1, %s2157_s16   ;;  %s3424_s26 = sld [smem:[#allocation17_spill]] }
 0x467   : > { %p29_p5 = scmp.ge.s32.totalorder %s32_s16, 6   ;;  %s3425_s8 = sld [smem:[#allocation18_spill]] }
 0x468   : > { %s3426_s29 = smov %s2121_s30  ;;  %s3427_s30 = smov %s2125_s9 }
 0x469   : > { %s3428_s9 = smov %s2341_s23  ;;  %s3429_s10 = smov %s2133_s11 }
 0x46a   : > { %s3430_s11 = smov %s2137_s12  ;;  %s3431_s12 = smov %s2317_s19 }
 0x46b   : > { %s3432_s6 = smov %s2149_s14  ;;  %s3433_s13 = smov %s2153_s15 }
 0x46c   : > { %s3434_s14 = smov %s3424_s26  ;;  %31 = sbr.rel (!%p29_p5) target bundleno = 20 (0x14), region = 123 }
 0x46d   : > { %s3435_s15 = smov %s3425_s8 }
 0x471   :  { %1521 = vsyncpa [#allocation4], 1 }
 0x472   :  { %1523 = vsyncpa [#allocation4 + $0x1], 1 }
 0x473   :  { %1524 = vsyncpa [#allocation7], 1 }
 0x474   :  { %1526 = vsyncpa [#allocation7 + $0x1], 1 }
 0x475   :  { %1527 = vsyncpa [#allocation5], 1 }
 0x476   :  { %1529 = vsyncpa [#allocation5 + $0x1], 1 }
 0x477   :  { %1530 = vsyncpa [#allocation10], 1 }
 0x478   :  { %1532 = vsyncpa [#allocation10 + $0x1], 1 }

</bundles_post_ra>
